<compile_context>
chip_gen: v5e
topology: v5e:2x2
jax: 0.10.0
libtpu: 0.0.40
codegen_flags: <defaults>
</compile_context>

<pallas_src>
import functools

import jax
import jax.numpy as jnp
from jax import lax
from jax.experimental import pallas as pl
from jax.experimental.pallas import tpu as pltpu

H1, H2 = 16, 8          # hidden sizes of lstm1 / lstm2 (from the PyTorch module)
GW = 128                # fused (lane-padded) gate width
NSIG = 3 * (H1 + H2)    # 72  : contiguous sigmoid region  [i1 f1 o1 i2 f2 o2]
NTANH = H1 + H2         # 24  : contiguous tanh region     [g1 g2]


# ----------------------------------------------------------------------------- kernel
def _simple_lstm_kernel(
    slab_ref,                 # (TT, TB, GW)  precomputed x@W1i + b (b2 in l2 columns)
    wrec_ref,                 # (H1+H2, GW)   fused recurrent weight  [h1 | h2] rows
    b_ref,                    # (1, GW)       fused bias (for the final de-skew step)
    wfc_ref, bfc_ref,         # (H2, OUT), (1, OUT)
    out_ref,                  # (TB, OUT)
    h1_ref, c1_ref,           # VMEM scratch (TB, H1)   state of layer 1 at time t
    h2_ref, c2_ref,           # VMEM scratch (TB, H2)   state of layer 2 at time t-1
    *, seq_len, padded,
):
    t_chunk = pl.program_id(1)
    TT = slab_ref.shape[0]

    # Reset recurrent state at the first time-chunk of every batch block.
    @pl.when(t_chunk == 0)
    def _():
        h1_ref[...] = jnp.zeros_like(h1_ref)
        c1_ref[...] = jnp.zeros_like(c1_ref)
        h2_ref[...] = jnp.zeros_like(h2_ref)
        c2_ref[...] = jnp.zeros_like(c2_ref)

    wrec = wrec_ref[...]
    t0 = t_chunk * TT

    def apply_both_layers(gates, c1, c2):
        sig = jax.nn.sigmoid(gates[:, :NSIG])
        tnh = jnp.tanh(gates[:, NSIG:NSIG + NTANH])
        i1 = sig[:, 0:H1]
        f1 = sig[:, H1:2 * H1]
        o1 = sig[:, 2 * H1:3 * H1]
        i2 = sig[:, 3 * H1:3 * H1 + H2]
        f2 = sig[:, 3 * H1 + H2:3 * H1 + 2 * H2]
        o2 = sig[:, 3 * H1 + 2 * H2:NSIG]
        g1 = tnh[:, :H1]
        g2 = tnh[:, H1:]
        c1n = f1 * c1 + i1 * g1
        h1n = o1 * jnp.tanh(c1n)
        c2n = f2 * c2 + i2 * g2
        h2n = o2 * jnp.tanh(c2n)
        return h1n, c1n, h2n, c2n

    def step(t, carry):
        # carry at the start of global step s:  h1(s-1), c1(s-1), h2(s-2), c2(s-2)
        h1, c1, h2, c2 = carry
        s = t0 + t
        state = jnp.concatenate([h1, h2], axis=1)            # (TB, H1+H2)
        gates = slab_ref[t] + jnp.dot(state, wrec,
                                      preferred_element_type=jnp.float32)
        h1n, c1n, h2n, c2n = apply_both_layers(gates, c1, c2)
        if padded:                                            # static branch
            v1 = s < seq_len
            h1n = jnp.where(v1, h1n, h1)
            c1n = jnp.where(v1, c1n, c1)
            v2 = jnp.logical_and(s >= 1, s < seq_len)
        else:
            v2 = s >= 1                                       # layer-2 skew edge (t=0)
        h2n = jnp.where(v2, h2n, h2)
        c2n = jnp.where(v2, c2n, c2)
        return h1n, c1n, h2n, c2n

    carry0 = (h1_ref[...], c1_ref[...], h2_ref[...], c2_ref[...])
    h1, c1, h2, c2 = lax.fori_loop(0, TT, step, carry0, unroll=min(TT, 16))

    # Carry state across time chunks.
    h1_ref[...] = h1
    c1_ref[...] = c1
    h2_ref[...] = h2
    c2_ref[...] = c2

    # De-skew: one final layer-2 step for time T-1, then the Linear head.
    @pl.when(t_chunk == pl.num_programs(1) - 1)
    def _():
        state = jnp.concatenate([h1, h2], axis=1)
        gates = jnp.dot(state, wrec, preferred_element_type=jnp.float32) + b_ref[...]
        sig = jax.nn.sigmoid(gates[:, :NSIG])
        tnh = jnp.tanh(gates[:, NSIG:NSIG + NTANH])
        i2 = sig[:, 3 * H1:3 * H1 + H2]
        f2 = sig[:, 3 * H1 + H2:3 * H1 + 2 * H2]
        o2 = sig[:, 3 * H1 + 2 * H2:NSIG]
        g2 = tnh[:, H1:]
        c2f = f2 * c2 + i2 * g2
        h2f = o2 * jnp.tanh(c2f)
        out_ref[...] = (
            jnp.dot(h2f, wfc_ref[...], preferred_element_type=jnp.float32)
            + bfc_ref[...]
        ).astype(out_ref.dtype)


# ----------------------------------------------------------------------------- wrapper
def _num_tensorcores_per_chip():
    """Only v7x has 2 Pallas-visible TensorCores per chip among v5e/v6e/v7x."""
    try:
        kind = jax.devices()[0].device_kind.lower()
    except Exception:
        return 1
    return 2 if ("v7" in kind or "7x" in kind) else 1


def simple_lstm_forward(x, kp, *, max_time_chunk=512):
    """x: (B, T, F) float32; kp: fused kernel params (see prepare_kernel_params)."""
    B, T, F = x.shape
    OUT = kp["wfc"].shape[1]

    # Time chunking: pad T up to a multiple of TT; padded steps are masked in-kernel.
    if T <= max_time_chunk:
        TT, T_pad = T, T
    else:
        TT = max_time_chunk
        T_pad = ((T + TT - 1) // TT) * TT
    nt = T_pad // TT

    # Batch split across TensorCores only where it helps (v7x); keep sublane-dense.
    nb = 2 if (_num_tensorcores_per_chip() >= 2 and B % 16 == 0) else 1
    TB = B // nb

    # Layer-1 input projection in plain XLA; streamed as a lane-dense 128-wide slab.
    # Layer-2 bias lives in the layer-2 gate columns of kp["b"], so the slab already
    # contains every per-step additive term.
    x_tm = jnp.transpose(x, (1, 0, 2)).astype(jnp.float32)          # (T, B, F)
    if T_pad > T:
        x_tm = jnp.concatenate(
            [x_tm, jnp.zeros((T_pad - T, B, F), jnp.float32)], axis=0)
    slab = jnp.einsum("tbf,fg->tbg", x_tm, kp["w1i"]) + kp["b"]     # (T_pad, B, GW)

    kernel = functools.partial(_simple_lstm_kernel, seq_len=T, padded=(T_pad > T))

    in_specs = [
        pl.BlockSpec((TT, TB, GW), lambda b, t: (t, b, 0)),   # streamed gate slab
        pl.BlockSpec(kp["wrec"].shape, lambda b, t: (0, 0)),
        pl.BlockSpec(kp["b"].shape, lambda b, t: (0, 0)),
        pl.BlockSpec(kp["wfc"].shape, lambda b, t: (0, 0)),
        pl.BlockSpec(kp["bfc"].shape, lambda b, t: (0, 0)),
    ]
    out_spec = pl.BlockSpec((TB, OUT), lambda b, t: (b, 0))

    # VMEM budget (4 B/elem): double-buffer only the streamed slab block.
    slab_block_bytes = TT * TB * GW * 4
    const_bytes = 4 * (kp["wrec"].size + kp["b"].size + kp["wfc"].size
                       + kp["bfc"].size + TB * OUT)
    scratch_bytes = 4 * TB * 2 * (H1 + H2)
    vmem_limit = int(min(60 * 1024 * 1024,
                         2 * slab_block_bytes + 2 * const_bytes + scratch_bytes
                         + 4 * 1024 * 1024))

    flops = int(2 * T_pad * B * (H1 + H2) * GW
                + 2 * B * ((H1 + H2) * GW + H2 * OUT))
    transcendentals = int(T_pad * B * (NSIG + NTANH + H1 + H2))
    bytes_accessed = int(4 * (slab.size + kp["wrec"].size + kp["b"].size
                              + kp["wfc"].size + kp["bfc"].size + B * OUT))

    grid_spec = pltpu.PrefetchScalarGridSpec(
        num_scalar_prefetch=0,
        grid=(nb, nt),
        in_specs=in_specs,
        out_specs=out_spec,
        scratch_shapes=[
            pltpu.VMEM((TB, H1), jnp.float32),   # h1(t)
            pltpu.VMEM((TB, H1), jnp.float32),   # c1(t)
            pltpu.VMEM((TB, H2), jnp.float32),   # h2(t-1)
            pltpu.VMEM((TB, H2), jnp.float32),   # c2(t-1)
        ],
    )

    return pl.pallas_call(
        kernel,
        out_shape=jax.ShapeDtypeStruct((B, OUT), jnp.float32),
        grid_spec=grid_spec,
        compiler_params=pltpu.CompilerParams(
            dimension_semantics=("parallel", "arbitrary"),
            vmem_limit_bytes=vmem_limit,
        ),
        cost_estimate=pl.CostEstimate(
            flops=flops, transcendentals=transcendentals,
            bytes_accessed=bytes_accessed),
    )(slab, kp["wrec"], kp["b"], kp["wfc"], kp["bfc"])


# ----------------------------------------------------------------------------- params
def init_params(key, input_size, future_steps=1):
    """PyTorch-layout params: w_ih (4H, in), w_hh (4H, H), biases (4H,), gate order
    (i, f, g, o); fc_w (future_steps, H2), fc_b (future_steps,)."""
    def lstm_layer(key, in_dim, hidden):
        k = 1.0 / jnp.sqrt(hidden)
        k1, k2, k3, k4 = jax.random.split(key, 4)
        return dict(
            w_ih=jax.random.uniform(k1, (4 * hidden, in_dim), jnp.float32, -k, k),
            w_hh=jax.random.uniform(k2, (4 * hidden, hidden), jnp.float32, -k, k),
            b_ih=jax.random.uniform(k3, (4 * hidden,), jnp.float32, -k, k),
            b_hh=jax.random.uniform(k4, (4 * hidden,), jnp.float32, -k, k),
        )

    k1, k2, k3 = jax.random.split(key, 3)
    l1 = lstm_layer(k1, input_size, H1)
    l2 = lstm_layer(k2, H1, H2)
    kw, kb = jax.random.split(k3)
    kf = 1.0 / jnp.sqrt(H2)
    fc_w = jax.random.uniform(kw, (future_steps, H2), jnp.float32, -kf, kf)
    fc_b = jax.random.uniform(kb, (future_steps,), jnp.float32, -kf, kf)
    return dict(lstm1=l1, lstm2=l2, fc_w=fc_w, fc_b=fc_b)


# Fused gate-column layout (width GW=128):
#   [0:16)=i1 [16:32)=f1 [32:48)=o1 [48:56)=i2 [56:64)=f2 [64:72)=o2
#   [72:88)=g1 [88:96)=g2 [96:128)=zero padding
_C_I1 = slice(0, H1)
_C_F1 = slice(H1, 2 * H1)
_C_O1 = slice(2 * H1, 3 * H1)
_C_I2 = slice(3 * H1, 3 * H1 + H2)
_C_F2 = slice(3 * H1 + H2, 3 * H1 + 2 * H2)
_C_O2 = slice(3 * H1 + 2 * H2, NSIG)
_C_G1 = slice(NSIG, NSIG + H1)
_C_G2 = slice(NSIG + H1, NSIG + H1 + H2)


def prepare_kernel_params(p):
    """Build the fused / lane-padded kernel layout from PyTorch-layout params."""
    def split_gates(w):                     # PyTorch gate order (i, f, g, o) on axis 0
        h = w.shape[0] // 4
        return w[:h], w[h:2 * h], w[2 * h:3 * h], w[3 * h:]

    l1, l2 = p["lstm1"], p["lstm2"]
    i1w, f1w, g1w, o1w = split_gates(l1["w_ih"])          # (H1, F)
    i1h, f1h, g1h, o1h = split_gates(l1["w_hh"])          # (H1, H1)
    i1b, f1b, g1b, o1b = split_gates(l1["b_ih"] + l1["b_hh"])
    i2w, f2w, g2w, o2w = split_gates(l2["w_ih"])          # (H2, H1)
    i2h, f2h, g2h, o2h = split_gates(l2["w_hh"])          # (H2, H2)
    i2b, f2b, g2b, o2b = split_gates(l2["b_ih"] + l2["b_hh"])

    F = l1["w_ih"].shape[1]

    # Input projection weight (only layer-1 columns are fed by x).
    w1i = jnp.zeros((F, GW), jnp.float32)
    w1i = w1i.at[:, _C_I1].set(i1w.T).at[:, _C_F1].set(f1w.T)
    w1i = w1i.at[:, _C_O1].set(o1w.T).at[:, _C_G1].set(g1w.T)

    # Fused bias: layer-1 bias in layer-1 columns, layer-2 bias in layer-2 columns.
    b = jnp.zeros((1, GW), jnp.float32)
    b = b.at[:, _C_I1].set(i1b[None]).at[:, _C_F1].set(f1b[None])
    b = b.at[:, _C_O1].set(o1b[None]).at[:, _C_G1].set(g1b[None])
    b = b.at[:, _C_I2].set(i2b[None]).at[:, _C_F2].set(f2b[None])
    b = b.at[:, _C_O2].set(o2b[None]).at[:, _C_G2].set(g2b[None])

    # Fused recurrent weight: rows [0:H1) multiply h1, rows [H1:H1+H2) multiply h2.
    wrec = jnp.zeros((H1 + H2, GW), jnp.float32)
    wrec = wrec.at[:H1, _C_I1].set(i1h.T).at[:H1, _C_F1].set(f1h.T)
    wrec = wrec.at[:H1, _C_O1].set(o1h.T).at[:H1, _C_G1].set(g1h.T)
    wrec = wrec.at[:H1, _C_I2].set(i2w.T).at[:H1, _C_F2].set(f2w.T)
    wrec = wrec.at[:H1, _C_O2].set(o2w.T).at[:H1, _C_G2].set(g2w.T)
    wrec = wrec.at[H1:, _C_I2].set(i2h.T).at[H1:, _C_F2].set(f2h.T)
    wrec = wrec.at[H1:, _C_O2].set(o2h.T).at[H1:, _C_G2].set(g2h.T)

    return dict(w1i=w1i, b=b, wrec=wrec,
                wfc=p["fc_w"].T, bfc=p["fc_b"][None, :])


# ----------------------------------------------------------------------------- reference
def reference_forward(x, params):
    """Pure-JAX reference mirroring torch.nn.LSTM semantics (gate order i, f, g, o)."""
    def cell(x_t, h, c, layer, hidden):
        g = (x_t @ layer["w_ih"].T + h @ layer["w_hh"].T
             + layer["b_ih"] + layer["b_hh"])
        i = jax.nn.sigmoid(g[:, :hidden])
        f = jax.nn.sigmoid(g[:, hidden:2 * hidden])
        gg = jnp.tanh(g[:, 2 * hidden:3 * hidden])
        o = jax.nn.sigmoid(g[:, 3 * hidden:])
        c = f * c + i * gg
        return o * jnp.tanh(c), c

    B, T, _ = x.shape
    h1 = c1 = jnp.zeros((B, H1), jnp.float32)
    h2 = c2 = jnp.zeros((B, H2), jnp.float32)
    for t in range(T):
        h1, c1 = cell(x[:, t], h1, c1, params["lstm1"], H1)
        h2, c2 = cell(h1, h2, c2, params["lstm2"], H2)
    return h2 @ params["fc_w"].T + params["fc_b"]


# ----------------------------------------------------------------------------- main
if __name__ == "__main__":
    key = jax.random.PRNGKey(0)
    k_x, k_p = jax.random.split(key)

    # batch is a multiple of 8 (sublane-dense).
    batch, seq, input_size, future_steps = 8, 8, 4, 1
    x = jax.random.normal(k_x, (batch, seq, input_size), dtype=jnp.float32)

    torch_style_params = init_params(k_p, input_size, future_steps)
    kernel_params = prepare_kernel_params(torch_style_params)

    out = simple_lstm_forward(x, kernel_params)
    jax.block_until_ready(out)

    ref = reference_forward(x, torch_style_params)
    assert out.shape == (batch, future_steps)
    assert jnp.allclose(out, ref, atol=1e-4, rtol=1e-4), float(
        jnp.max(jnp.abs(out - ref)))

    print("KERNEL_OK")
</pallas_src>

<mosaic_0001>
module attributes {stable_mosaic.version = 11 : i64} {
  func.func @_simple_lstm_kernel(%arg0: i32, %arg1: i32, %arg2: memref<8x8x128xf32, #tpu.memory_space<vmem>>, %arg3: memref<24x128xf32, #tpu.memory_space<vmem>>, %arg4: memref<1x128xf32, #tpu.memory_space<vmem>>, %arg5: memref<8x1xf32, #tpu.memory_space<vmem>>, %arg6: memref<1x1xf32, #tpu.memory_space<vmem>>, %arg7: memref<8x1xf32, #tpu.memory_space<vmem>>, %arg8: memref<8x16xf32, #tpu.memory_space<vmem>>, %arg9: memref<8x16xf32, #tpu.memory_space<vmem>>, %arg10: memref<8x8xf32, #tpu.memory_space<vmem>>, %arg11: memref<8x8xf32, #tpu.memory_space<vmem>>) attributes {dimension_semantics = [#tpu.dimension_semantics<parallel>, #tpu.dimension_semantics<arbitrary>], iteration_bounds = array<i64: 1, 1>, scalar_prefetch = 0 : i64, scratch_operands = 4 : i64, tpu.core_type = #tpu.core_type<tc>, window_params = [{transform_indices = @transform_0, window_bounds = array<i64: 8, 8, 128>}, {pipeline_mode = #tpu.pipeline_mode<synchronous>, transform_indices = @transform_1, window_bounds = array<i64: 24, 128>}, {pipeline_mode = #tpu.pipeline_mode<synchronous>, transform_indices = @transform_2, window_bounds = array<i64: 1, 128>}, {pipeline_mode = #tpu.pipeline_mode<synchronous>, transform_indices = @transform_3, window_bounds = array<i64: 8, 1>}, {pipeline_mode = #tpu.pipeline_mode<synchronous>, transform_indices = @transform_4, window_bounds = array<i64: 1, 1>}, {transform_indices = @transform_5, window_bounds = array<i64: 8, 1>}]} {
    %c0_i32 = arith.constant 0 : i32
    %0 = arith.cmpi eq, %arg1, %c0_i32 : i32
    %1 = arith.extui %0 : i1 to i32
    %c0_i32_0 = arith.constant 0 : i32
    %2 = arith.cmpi ne, %1, %c0_i32_0 : i32
    scf.if %2 {
      %cst_61 = arith.constant 0.000000e+00 : f32
      %304 = vector.broadcast %cst_61 : f32 to vector<8x16xf32>
      %c0_62 = arith.constant 0 : index
      %c0_63 = arith.constant 0 : index
      %305 = vector.load %arg8[%c0_62, %c0_63] : memref<8x16xf32, #tpu.memory_space<vmem>>, vector<8x16xf32>
      tpu.vector_store %arg8[%c0_62, %c0_63], %304 {strides = array<i32>} : memref<8x16xf32, #tpu.memory_space<vmem>>, vector<8x16xf32>,
      %cst_64 = arith.constant 0.000000e+00 : f32
      %306 = vector.broadcast %cst_64 : f32 to vector<8x16xf32>
      %c0_65 = arith.constant 0 : index
      %c0_66 = arith.constant 0 : index
      %307 = vector.load %arg9[%c0_65, %c0_66] : memref<8x16xf32, #tpu.memory_space<vmem>>, vector<8x16xf32>
      tpu.vector_store %arg9[%c0_65, %c0_66], %306 {strides = array<i32>} : memref<8x16xf32, #tpu.memory_space<vmem>>, vector<8x16xf32>,
      %cst_67 = arith.constant 0.000000e+00 : f32
      %308 = vector.broadcast %cst_67 : f32 to vector<8x8xf32>
      %c0_68 = arith.constant 0 : index
      %c0_69 = arith.constant 0 : index
      %309 = vector.load %arg10[%c0_68, %c0_69] : memref<8x8xf32, #tpu.memory_space<vmem>>, vector<8x8xf32>
      tpu.vector_store %arg10[%c0_68, %c0_69], %308 {strides = array<i32>} : memref<8x8xf32, #tpu.memory_space<vmem>>, vector<8x8xf32>,
      %cst_70 = arith.constant 0.000000e+00 : f32
      %310 = vector.broadcast %cst_70 : f32 to vector<8x8xf32>
      %c0_71 = arith.constant 0 : index
      %c0_72 = arith.constant 0 : index
      %311 = vector.load %arg11[%c0_71, %c0_72] : memref<8x8xf32, #tpu.memory_space<vmem>>, vector<8x8xf32>
      tpu.vector_store %arg11[%c0_71, %c0_72], %310 {strides = array<i32>} : memref<8x8xf32, #tpu.memory_space<vmem>>, vector<8x8xf32>,
    } else {
    }
    %c0 = arith.constant 0 : index
    %c0_1 = arith.constant 0 : index
    %3 = vector.load %arg3[%c0, %c0_1] : memref<24x128xf32, #tpu.memory_space<vmem>>, vector<24x128xf32>
    %c8_i32 = arith.constant 8 : i32
    %4 = arith.muli %arg1, %c8_i32 : i32
    %c0_2 = arith.constant 0 : index
    %c0_3 = arith.constant 0 : index
    %5 = vector.load %arg8[%c0_2, %c0_3] : memref<8x16xf32, #tpu.memory_space<vmem>>, vector<8x16xf32>
    %c0_4 = arith.constant 0 : index
    %c0_5 = arith.constant 0 : index
    %6 = vector.load %arg9[%c0_4, %c0_5] : memref<8x16xf32, #tpu.memory_space<vmem>>, vector<8x16xf32>
    %c0_6 = arith.constant 0 : index
    %c0_7 = arith.constant 0 : index
    %7 = vector.load %arg10[%c0_6, %c0_7] : memref<8x8xf32, #tpu.memory_space<vmem>>, vector<8x8xf32>
    %c0_8 = arith.constant 0 : index
    %c0_9 = arith.constant 0 : index
    %8 = vector.load %arg11[%c0_8, %c0_9] : memref<8x8xf32, #tpu.memory_space<vmem>>, vector<8x8xf32>
    %c0_i32_10 = arith.constant 0 : i32
    %9 = arith.addi %4, %c0_i32_10 : i32
    %10 = tpu.concatenate %5, %7 in 1 : vector<8x16xf32>, vector<8x8xf32> -> vector<8x24xf32>
    %11 = arith.index_cast %c0_i32_10 : i32 to index
    %c0_11 = arith.constant 0 : index
    %c0_12 = arith.constant 0 : index
    %12 = vector.load %arg2[%11, %c0_11, %c0_12] : memref<8x8x128xf32, #tpu.memory_space<vmem>>, vector<1x8x128xf32>
    %13 = vector.shape_cast %12 : vector<1x8x128xf32> to vector<8x128xf32>
    %cst = arith.constant dense<0.000000e+00> : vector<8x128xf32>
    %14 = tpu.matmul %10, %3, %cst {dimension_numbers = #tpu.dot_dimension_numbers<[1], [0], [0], [1], [0, 0, 1, 1], [], []>} : vector<8x24xf32>, vector<24x128xf32>, vector<8x128xf32> -> vector<8x128xf32>
    %15 = arith.addf %13, %14 : vector<8x128xf32>
    %16 = vector.extract_strided_slice %15 {offsets = [0, 0], sizes = [8, 72], strides = [1, 1]} : vector<8x128xf32> to vector<8x72xf32>
    %17 = arith.negf %16 : vector<8x72xf32>
    %18 = math.exp %17 : vector<8x72xf32>
    %cst_13 = arith.constant 1.000000e+00 : f32
    %19 = vector.broadcast %cst_13 : f32 to vector<8x72xf32>
    %20 = arith.addf %19, %18 : vector<8x72xf32>
    %21 = arith.divf %19, %20 : vector<8x72xf32>
    %22 = vector.extract_strided_slice %15 {offsets = [0, 72], sizes = [8, 24], strides = [1, 1]} : vector<8x128xf32> to vector<8x24xf32>
    %23 = math.tanh %22 : vector<8x24xf32>
    %24 = vector.extract_strided_slice %21 {offsets = [0, 0], sizes = [8, 16], strides = [1, 1]} : vector<8x72xf32> to vector<8x16xf32>
    %25 = vector.extract_strided_slice %21 {offsets = [0, 16], sizes = [8, 16], strides = [1, 1]} : vector<8x72xf32> to vector<8x16xf32>
    %26 = vector.extract_strided_slice %21 {offsets = [0, 32], sizes = [8, 16], strides = [1, 1]} : vector<8x72xf32> to vector<8x16xf32>
    %27 = vector.extract_strided_slice %21 {offsets = [0, 48], sizes = [8, 8], strides = [1, 1]} : vector<8x72xf32> to vector<8x8xf32>
    %28 = vector.extract_strided_slice %21 {offsets = [0, 56], sizes = [8, 8], strides = [1, 1]} : vector<8x72xf32> to vector<8x8xf32>
    %29 = vector.extract_strided_slice %21 {offsets = [0, 64], sizes = [8, 8], strides = [1, 1]} : vector<8x72xf32> to vector<8x8xf32>
    %30 = vector.extract_strided_slice %23 {offsets = [0, 0], sizes = [8, 16], strides = [1, 1]} : vector<8x24xf32> to vector<8x16xf32>
    %31 = vector.extract_strided_slice %23 {offsets = [0, 16], sizes = [8, 8], strides = [1, 1]} : vector<8x24xf32> to vector<8x8xf32>
    %32 = arith.mulf %25, %6 : vector<8x16xf32>
    %33 = arith.mulf %24, %30 : vector<8x16xf32>
    %34 = arith.addf %32, %33 : vector<8x16xf32>
    %35 = math.tanh %34 : vector<8x16xf32>
    %36 = arith.mulf %26, %35 : vector<8x16xf32>
    %37 = arith.mulf %28, %8 : vector<8x8xf32>
    %38 = arith.mulf %27, %31 : vector<8x8xf32>
    %39 = arith.addf %37, %38 : vector<8x8xf32>
    %40 = math.tanh %39 : vector<8x8xf32>
    %41 = arith.mulf %29, %40 : vector<8x8xf32>
    %c1_i32 = arith.constant 1 : i32
    %42 = arith.cmpi sge, %9, %c1_i32 : i32
    %43 = arith.select %42, %41, %7 : vector<8x8xf32>
    %44 = arith.select %42, %39, %8 : vector<8x8xf32>
    %c1_i32_14 = arith.constant 1 : i32
    %45 = arith.addi %4, %c1_i32_14 : i32
    %46 = tpu.concatenate %36, %43 in 1 : vector<8x16xf32>, vector<8x8xf32> -> vector<8x24xf32>
    %47 = arith.index_cast %c1_i32_14 : i32 to index
    %c0_15 = arith.constant 0 : index
    %c0_16 = arith.constant 0 : index
    %48 = vector.load %arg2[%47, %c0_15, %c0_16] : memref<8x8x128xf32, #tpu.memory_space<vmem>>, vector<1x8x128xf32>
    %49 = vector.shape_cast %48 : vector<1x8x128xf32> to vector<8x128xf32>
    %cst_17 = arith.constant dense<0.000000e+00> : vector<8x128xf32>
    %50 = tpu.matmul %46, %3, %cst_17 {dimension_numbers = #tpu.dot_dimension_numbers<[1], [0], [0], [1], [0, 0, 1, 1], [], []>} : vector<8x24xf32>, vector<24x128xf32>, vector<8x128xf32> -> vector<8x128xf32>
    %51 = arith.addf %49, %50 : vector<8x128xf32>
    %52 = vector.extract_strided_slice %51 {offsets = [0, 0], sizes = [8, 72], strides = [1, 1]} : vector<8x128xf32> to vector<8x72xf32>
    %53 = arith.negf %52 : vector<8x72xf32>
    %54 = math.exp %53 : vector<8x72xf32>
    %cst_18 = arith.constant 1.000000e+00 : f32
    %55 = vector.broadcast %cst_18 : f32 to vector<8x72xf32>
    %56 = arith.addf %55, %54 : vector<8x72xf32>
    %57 = arith.divf %55, %56 : vector<8x72xf32>
    %58 = vector.extract_strided_slice %51 {offsets = [0, 72], sizes = [8, 24], strides = [1, 1]} : vector<8x128xf32> to vector<8x24xf32>
    %59 = math.tanh %58 : vector<8x24xf32>
    %60 = vector.extract_strided_slice %57 {offsets = [0, 0], sizes = [8, 16], strides = [1, 1]} : vector<8x72xf32> to vector<8x16xf32>
    %61 = vector.extract_strided_slice %57 {offsets = [0, 16], sizes = [8, 16], strides = [1, 1]} : vector<8x72xf32> to vector<8x16xf32>
    %62 = vector.extract_strided_slice %57 {offsets = [0, 32], sizes = [8, 16], strides = [1, 1]} : vector<8x72xf32> to vector<8x16xf32>
    %63 = vector.extract_strided_slice %57 {offsets = [0, 48], sizes = [8, 8], strides = [1, 1]} : vector<8x72xf32> to vector<8x8xf32>
    %64 = vector.extract_strided_slice %57 {offsets = [0, 56], sizes = [8, 8], strides = [1, 1]} : vector<8x72xf32> to vector<8x8xf32>
    %65 = vector.extract_strided_slice %57 {offsets = [0, 64], sizes = [8, 8], strides = [1, 1]} : vector<8x72xf32> to vector<8x8xf32>
    %66 = vector.extract_strided_slice %59 {offsets = [0, 0], sizes = [8, 16], strides = [1, 1]} : vector<8x24xf32> to vector<8x16xf32>
    %67 = vector.extract_strided_slice %59 {offsets = [0, 16], sizes = [8, 8], strides = [1, 1]} : vector<8x24xf32> to vector<8x8xf32>
    %68 = arith.mulf %61, %34 : vector<8x16xf32>
    %69 = arith.mulf %60, %66 : vector<8x16xf32>
    %70 = arith.addf %68, %69 : vector<8x16xf32>
    %71 = math.tanh %70 : vector<8x16xf32>
    %72 = arith.mulf %62, %71 : vector<8x16xf32>
    %73 = arith.mulf %64, %44 : vector<8x8xf32>
    %74 = arith.mulf %63, %67 : vector<8x8xf32>
    %75 = arith.addf %73, %74 : vector<8x8xf32>
    %76 = math.tanh %75 : vector<8x8xf32>
    %77 = arith.mulf %65, %76 : vector<8x8xf32>
    %c1_i32_19 = arith.constant 1 : i32
    %78 = arith.cmpi sge, %45, %c1_i32_19 : i32
    %79 = arith.select %78, %77, %43 : vector<8x8xf32>
    %80 = arith.select %78, %75, %44 : vector<8x8xf32>
    %c2_i32 = arith.constant 2 : i32
    %81 = arith.addi %4, %c2_i32 : i32
    %82 = tpu.concatenate %72, %79 in 1 : vector<8x16xf32>, vector<8x8xf32> -> vector<8x24xf32>
    %83 = arith.index_cast %c2_i32 : i32 to index
    %c0_20 = arith.constant 0 : index
    %c0_21 = arith.constant 0 : index
    %84 = vector.load %arg2[%83, %c0_20, %c0_21] : memref<8x8x128xf32, #tpu.memory_space<vmem>>, vector<1x8x128xf32>
    %85 = vector.shape_cast %84 : vector<1x8x128xf32> to vector<8x128xf32>
    %cst_22 = arith.constant dense<0.000000e+00> : vector<8x128xf32>
    %86 = tpu.matmul %82, %3, %cst_22 {dimension_numbers = #tpu.dot_dimension_numbers<[1], [0], [0], [1], [0, 0, 1, 1], [], []>} : vector<8x24xf32>, vector<24x128xf32>, vector<8x128xf32> -> vector<8x128xf32>
    %87 = arith.addf %85, %86 : vector<8x128xf32>
    %88 = vector.extract_strided_slice %87 {offsets = [0, 0], sizes = [8, 72], strides = [1, 1]} : vector<8x128xf32> to vector<8x72xf32>
    %89 = arith.negf %88 : vector<8x72xf32>
    %90 = math.exp %89 : vector<8x72xf32>
    %cst_23 = arith.constant 1.000000e+00 : f32
    %91 = vector.broadcast %cst_23 : f32 to vector<8x72xf32>
    %92 = arith.addf %91, %90 : vector<8x72xf32>
    %93 = arith.divf %91, %92 : vector<8x72xf32>
    %94 = vector.extract_strided_slice %87 {offsets = [0, 72], sizes = [8, 24], strides = [1, 1]} : vector<8x128xf32> to vector<8x24xf32>
    %95 = math.tanh %94 : vector<8x24xf32>
    %96 = vector.extract_strided_slice %93 {offsets = [0, 0], sizes = [8, 16], strides = [1, 1]} : vector<8x72xf32> to vector<8x16xf32>
    %97 = vector.extract_strided_slice %93 {offsets = [0, 16], sizes = [8, 16], strides = [1, 1]} : vector<8x72xf32> to vector<8x16xf32>
    %98 = vector.extract_strided_slice %93 {offsets = [0, 32], sizes = [8, 16], strides = [1, 1]} : vector<8x72xf32> to vector<8x16xf32>
    %99 = vector.extract_strided_slice %93 {offsets = [0, 48], sizes = [8, 8], strides = [1, 1]} : vector<8x72xf32> to vector<8x8xf32>
    %100 = vector.extract_strided_slice %93 {offsets = [0, 56], sizes = [8, 8], strides = [1, 1]} : vector<8x72xf32> to vector<8x8xf32>
    %101 = vector.extract_strided_slice %93 {offsets = [0, 64], sizes = [8, 8], strides = [1, 1]} : vector<8x72xf32> to vector<8x8xf32>
    %102 = vector.extract_strided_slice %95 {offsets = [0, 0], sizes = [8, 16], strides = [1, 1]} : vector<8x24xf32> to vector<8x16xf32>
    %103 = vector.extract_strided_slice %95 {offsets = [0, 16], sizes = [8, 8], strides = [1, 1]} : vector<8x24xf32> to vector<8x8xf32>
    %104 = arith.mulf %97, %70 : vector<8x16xf32>
    %105 = arith.mulf %96, %102 : vector<8x16xf32>
    %106 = arith.addf %104, %105 : vector<8x16xf32>
    %107 = math.tanh %106 : vector<8x16xf32>
    %108 = arith.mulf %98, %107 : vector<8x16xf32>
    %109 = arith.mulf %100, %80 : vector<8x8xf32>
    %110 = arith.mulf %99, %103 : vector<8x8xf32>
    %111 = arith.addf %109, %110 : vector<8x8xf32>
    %112 = math.tanh %111 : vector<8x8xf32>
    %113 = arith.mulf %101, %112 : vector<8x8xf32>
    %c1_i32_24 = arith.constant 1 : i32
    %114 = arith.cmpi sge, %81, %c1_i32_24 : i32
    %115 = arith.select %114, %113, %79 : vector<8x8xf32>
    %116 = arith.select %114, %111, %80 : vector<8x8xf32>
    %c3_i32 = arith.constant 3 : i32
    %117 = arith.addi %4, %c3_i32 : i32
    %118 = tpu.concatenate %108, %115 in 1 : vector<8x16xf32>, vector<8x8xf32> -> vector<8x24xf32>
    %119 = arith.index_cast %c3_i32 : i32 to index
    %c0_25 = arith.constant 0 : index
    %c0_26 = arith.constant 0 : index
    %120 = vector.load %arg2[%119, %c0_25, %c0_26] : memref<8x8x128xf32, #tpu.memory_space<vmem>>, vector<1x8x128xf32>
    %121 = vector.shape_cast %120 : vector<1x8x128xf32> to vector<8x128xf32>
    %cst_27 = arith.constant dense<0.000000e+00> : vector<8x128xf32>
    %122 = tpu.matmul %118, %3, %cst_27 {dimension_numbers = #tpu.dot_dimension_numbers<[1], [0], [0], [1], [0, 0, 1, 1], [], []>} : vector<8x24xf32>, vector<24x128xf32>, vector<8x128xf32> -> vector<8x128xf32>
    %123 = arith.addf %121, %122 : vector<8x128xf32>
    %124 = vector.extract_strided_slice %123 {offsets = [0, 0], sizes = [8, 72], strides = [1, 1]} : vector<8x128xf32> to vector<8x72xf32>
    %125 = arith.negf %124 : vector<8x72xf32>
    %126 = math.exp %125 : vector<8x72xf32>
    %cst_28 = arith.constant 1.000000e+00 : f32
    %127 = vector.broadcast %cst_28 : f32 to vector<8x72xf32>
    %128 = arith.addf %127, %126 : vector<8x72xf32>
    %129 = arith.divf %127, %128 : vector<8x72xf32>
    %130 = vector.extract_strided_slice %123 {offsets = [0, 72], sizes = [8, 24], strides = [1, 1]} : vector<8x128xf32> to vector<8x24xf32>
    %131 = math.tanh %130 : vector<8x24xf32>
    %132 = vector.extract_strided_slice %129 {offsets = [0, 0], sizes = [8, 16], strides = [1, 1]} : vector<8x72xf32> to vector<8x16xf32>
    %133 = vector.extract_strided_slice %129 {offsets = [0, 16], sizes = [8, 16], strides = [1, 1]} : vector<8x72xf32> to vector<8x16xf32>
    %134 = vector.extract_strided_slice %129 {offsets = [0, 32], sizes = [8, 16], strides = [1, 1]} : vector<8x72xf32> to vector<8x16xf32>
    %135 = vector.extract_strided_slice %129 {offsets = [0, 48], sizes = [8, 8], strides = [1, 1]} : vector<8x72xf32> to vector<8x8xf32>
    %136 = vector.extract_strided_slice %129 {offsets = [0, 56], sizes = [8, 8], strides = [1, 1]} : vector<8x72xf32> to vector<8x8xf32>
    %137 = vector.extract_strided_slice %129 {offsets = [0, 64], sizes = [8, 8], strides = [1, 1]} : vector<8x72xf32> to vector<8x8xf32>
    %138 = vector.extract_strided_slice %131 {offsets = [0, 0], sizes = [8, 16], strides = [1, 1]} : vector<8x24xf32> to vector<8x16xf32>
    %139 = vector.extract_strided_slice %131 {offsets = [0, 16], sizes = [8, 8], strides = [1, 1]} : vector<8x24xf32> to vector<8x8xf32>
    %140 = arith.mulf %133, %106 : vector<8x16xf32>
    %141 = arith.mulf %132, %138 : vector<8x16xf32>
    %142 = arith.addf %140, %141 : vector<8x16xf32>
    %143 = math.tanh %142 : vector<8x16xf32>
    %144 = arith.mulf %134, %143 : vector<8x16xf32>
    %145 = arith.mulf %136, %116 : vector<8x8xf32>
    %146 = arith.mulf %135, %139 : vector<8x8xf32>
    %147 = arith.addf %145, %146 : vector<8x8xf32>
    %148 = math.tanh %147 : vector<8x8xf32>
    %149 = arith.mulf %137, %148 : vector<8x8xf32>
    %c1_i32_29 = arith.constant 1 : i32
    %150 = arith.cmpi sge, %117, %c1_i32_29 : i32
    %151 = arith.select %150, %149, %115 : vector<8x8xf32>
    %152 = arith.select %150, %147, %116 : vector<8x8xf32>
    %c4_i32 = arith.constant 4 : i32
    %153 = arith.addi %4, %c4_i32 : i32
    %154 = tpu.concatenate %144, %151 in 1 : vector<8x16xf32>, vector<8x8xf32> -> vector<8x24xf32>
    %155 = arith.index_cast %c4_i32 : i32 to index
    %c0_30 = arith.constant 0 : index
    %c0_31 = arith.constant 0 : index
    %156 = vector.load %arg2[%155, %c0_30, %c0_31] : memref<8x8x128xf32, #tpu.memory_space<vmem>>, vector<1x8x128xf32>
    %157 = vector.shape_cast %156 : vector<1x8x128xf32> to vector<8x128xf32>
    %cst_32 = arith.constant dense<0.000000e+00> : vector<8x128xf32>
    %158 = tpu.matmul %154, %3, %cst_32 {dimension_numbers = #tpu.dot_dimension_numbers<[1], [0], [0], [1], [0, 0, 1, 1], [], []>} : vector<8x24xf32>, vector<24x128xf32>, vector<8x128xf32> -> vector<8x128xf32>
    %159 = arith.addf %157, %158 : vector<8x128xf32>
    %160 = vector.extract_strided_slice %159 {offsets = [0, 0], sizes = [8, 72], strides = [1, 1]} : vector<8x128xf32> to vector<8x72xf32>
    %161 = arith.negf %160 : vector<8x72xf32>
    %162 = math.exp %161 : vector<8x72xf32>
    %cst_33 = arith.constant 1.000000e+00 : f32
    %163 = vector.broadcast %cst_33 : f32 to vector<8x72xf32>
    %164 = arith.addf %163, %162 : vector<8x72xf32>
    %165 = arith.divf %163, %164 : vector<8x72xf32>
    %166 = vector.extract_strided_slice %159 {offsets = [0, 72], sizes = [8, 24], strides = [1, 1]} : vector<8x128xf32> to vector<8x24xf32>
    %167 = math.tanh %166 : vector<8x24xf32>
    %168 = vector.extract_strided_slice %165 {offsets = [0, 0], sizes = [8, 16], strides = [1, 1]} : vector<8x72xf32> to vector<8x16xf32>
    %169 = vector.extract_strided_slice %165 {offsets = [0, 16], sizes = [8, 16], strides = [1, 1]} : vector<8x72xf32> to vector<8x16xf32>
    %170 = vector.extract_strided_slice %165 {offsets = [0, 32], sizes = [8, 16], strides = [1, 1]} : vector<8x72xf32> to vector<8x16xf32>
    %171 = vector.extract_strided_slice %165 {offsets = [0, 48], sizes = [8, 8], strides = [1, 1]} : vector<8x72xf32> to vector<8x8xf32>
    %172 = vector.extract_strided_slice %165 {offsets = [0, 56], sizes = [8, 8], strides = [1, 1]} : vector<8x72xf32> to vector<8x8xf32>
    %173 = vector.extract_strided_slice %165 {offsets = [0, 64], sizes = [8, 8], strides = [1, 1]} : vector<8x72xf32> to vector<8x8xf32>
    %174 = vector.extract_strided_slice %167 {offsets = [0, 0], sizes = [8, 16], strides = [1, 1]} : vector<8x24xf32> to vector<8x16xf32>
    %175 = vector.extract_strided_slice %167 {offsets = [0, 16], sizes = [8, 8], strides = [1, 1]} : vector<8x24xf32> to vector<8x8xf32>
    %176 = arith.mulf %169, %142 : vector<8x16xf32>
    %177 = arith.mulf %168, %174 : vector<8x16xf32>
    %178 = arith.addf %176, %177 : vector<8x16xf32>
    %179 = math.tanh %178 : vector<8x16xf32>
    %180 = arith.mulf %170, %179 : vector<8x16xf32>
    %181 = arith.mulf %172, %152 : vector<8x8xf32>
    %182 = arith.mulf %171, %175 : vector<8x8xf32>
    %183 = arith.addf %181, %182 : vector<8x8xf32>
    %184 = math.tanh %183 : vector<8x8xf32>
    %185 = arith.mulf %173, %184 : vector<8x8xf32>
    %c1_i32_34 = arith.constant 1 : i32
    %186 = arith.cmpi sge, %153, %c1_i32_34 : i32
    %187 = arith.select %186, %185, %151 : vector<8x8xf32>
    %188 = arith.select %186, %183, %152 : vector<8x8xf32>
    %c5_i32 = arith.constant 5 : i32
    %189 = arith.addi %4, %c5_i32 : i32
    %190 = tpu.concatenate %180, %187 in 1 : vector<8x16xf32>, vector<8x8xf32> -> vector<8x24xf32>
    %191 = arith.index_cast %c5_i32 : i32 to index
    %c0_35 = arith.constant 0 : index
    %c0_36 = arith.constant 0 : index
    %192 = vector.load %arg2[%191, %c0_35, %c0_36] : memref<8x8x128xf32, #tpu.memory_space<vmem>>, vector<1x8x128xf32>
    %193 = vector.shape_cast %192 : vector<1x8x128xf32> to vector<8x128xf32>
    %cst_37 = arith.constant dense<0.000000e+00> : vector<8x128xf32>
    %194 = tpu.matmul %190, %3, %cst_37 {dimension_numbers = #tpu.dot_dimension_numbers<[1], [0], [0], [1], [0, 0, 1, 1], [], []>} : vector<8x24xf32>, vector<24x128xf32>, vector<8x128xf32> -> vector<8x128xf32>
    %195 = arith.addf %193, %194 : vector<8x128xf32>
    %196 = vector.extract_strided_slice %195 {offsets = [0, 0], sizes = [8, 72], strides = [1, 1]} : vector<8x128xf32> to vector<8x72xf32>
    %197 = arith.negf %196 : vector<8x72xf32>
    %198 = math.exp %197 : vector<8x72xf32>
    %cst_38 = arith.constant 1.000000e+00 : f32
    %199 = vector.broadcast %cst_38 : f32 to vector<8x72xf32>
    %200 = arith.addf %199, %198 : vector<8x72xf32>
    %201 = arith.divf %199, %200 : vector<8x72xf32>
    %202 = vector.extract_strided_slice %195 {offsets = [0, 72], sizes = [8, 24], strides = [1, 1]} : vector<8x128xf32> to vector<8x24xf32>
    %203 = math.tanh %202 : vector<8x24xf32>
    %204 = vector.extract_strided_slice %201 {offsets = [0, 0], sizes = [8, 16], strides = [1, 1]} : vector<8x72xf32> to vector<8x16xf32>
    %205 = vector.extract_strided_slice %201 {offsets = [0, 16], sizes = [8, 16], strides = [1, 1]} : vector<8x72xf32> to vector<8x16xf32>
    %206 = vector.extract_strided_slice %201 {offsets = [0, 32], sizes = [8, 16], strides = [1, 1]} : vector<8x72xf32> to vector<8x16xf32>
    %207 = vector.extract_strided_slice %201 {offsets = [0, 48], sizes = [8, 8], strides = [1, 1]} : vector<8x72xf32> to vector<8x8xf32>
    %208 = vector.extract_strided_slice %201 {offsets = [0, 56], sizes = [8, 8], strides = [1, 1]} : vector<8x72xf32> to vector<8x8xf32>
    %209 = vector.extract_strided_slice %201 {offsets = [0, 64], sizes = [8, 8], strides = [1, 1]} : vector<8x72xf32> to vector<8x8xf32>
    %210 = vector.extract_strided_slice %203 {offsets = [0, 0], sizes = [8, 16], strides = [1, 1]} : vector<8x24xf32> to vector<8x16xf32>
    %211 = vector.extract_strided_slice %203 {offsets = [0, 16], sizes = [8, 8], strides = [1, 1]} : vector<8x24xf32> to vector<8x8xf32>
    %212 = arith.mulf %205, %178 : vector<8x16xf32>
    %213 = arith.mulf %204, %210 : vector<8x16xf32>
    %214 = arith.addf %212, %213 : vector<8x16xf32>
    %215 = math.tanh %214 : vector<8x16xf32>
    %216 = arith.mulf %206, %215 : vector<8x16xf32>
    %217 = arith.mulf %208, %188 : vector<8x8xf32>
    %218 = arith.mulf %207, %211 : vector<8x8xf32>
    %219 = arith.addf %217, %218 : vector<8x8xf32>
    %220 = math.tanh %219 : vector<8x8xf32>
    %221 = arith.mulf %209, %220 : vector<8x8xf32>
    %c1_i32_39 = arith.constant 1 : i32
    %222 = arith.cmpi sge, %189, %c1_i32_39 : i32
    %223 = arith.select %222, %221, %187 : vector<8x8xf32>
    %224 = arith.select %222, %219, %188 : vector<8x8xf32>
    %c6_i32 = arith.constant 6 : i32
    %225 = arith.addi %4, %c6_i32 : i32
    %226 = tpu.concatenate %216, %223 in 1 : vector<8x16xf32>, vector<8x8xf32> -> vector<8x24xf32>
    %227 = arith.index_cast %c6_i32 : i32 to index
    %c0_40 = arith.constant 0 : index
    %c0_41 = arith.constant 0 : index
    %228 = vector.load %arg2[%227, %c0_40, %c0_41] : memref<8x8x128xf32, #tpu.memory_space<vmem>>, vector<1x8x128xf32>
    %229 = vector.shape_cast %228 : vector<1x8x128xf32> to vector<8x128xf32>
    %cst_42 = arith.constant dense<0.000000e+00> : vector<8x128xf32>
    %230 = tpu.matmul %226, %3, %cst_42 {dimension_numbers = #tpu.dot_dimension_numbers<[1], [0], [0], [1], [0, 0, 1, 1], [], []>} : vector<8x24xf32>, vector<24x128xf32>, vector<8x128xf32> -> vector<8x128xf32>
    %231 = arith.addf %229, %230 : vector<8x128xf32>
    %232 = vector.extract_strided_slice %231 {offsets = [0, 0], sizes = [8, 72], strides = [1, 1]} : vector<8x128xf32> to vector<8x72xf32>
    %233 = arith.negf %232 : vector<8x72xf32>
    %234 = math.exp %233 : vector<8x72xf32>
    %cst_43 = arith.constant 1.000000e+00 : f32
    %235 = vector.broadcast %cst_43 : f32 to vector<8x72xf32>
    %236 = arith.addf %235, %234 : vector<8x72xf32>
    %237 = arith.divf %235, %236 : vector<8x72xf32>
    %238 = vector.extract_strided_slice %231 {offsets = [0, 72], sizes = [8, 24], strides = [1, 1]} : vector<8x128xf32> to vector<8x24xf32>
    %239 = math.tanh %238 : vector<8x24xf32>
    %240 = vector.extract_strided_slice %237 {offsets = [0, 0], sizes = [8, 16], strides = [1, 1]} : vector<8x72xf32> to vector<8x16xf32>
    %241 = vector.extract_strided_slice %237 {offsets = [0, 16], sizes = [8, 16], strides = [1, 1]} : vector<8x72xf32> to vector<8x16xf32>
    %242 = vector.extract_strided_slice %237 {offsets = [0, 32], sizes = [8, 16], strides = [1, 1]} : vector<8x72xf32> to vector<8x16xf32>
    %243 = vector.extract_strided_slice %237 {offsets = [0, 48], sizes = [8, 8], strides = [1, 1]} : vector<8x72xf32> to vector<8x8xf32>
    %244 = vector.extract_strided_slice %237 {offsets = [0, 56], sizes = [8, 8], strides = [1, 1]} : vector<8x72xf32> to vector<8x8xf32>
    %245 = vector.extract_strided_slice %237 {offsets = [0, 64], sizes = [8, 8], strides = [1, 1]} : vector<8x72xf32> to vector<8x8xf32>
    %246 = vector.extract_strided_slice %239 {offsets = [0, 0], sizes = [8, 16], strides = [1, 1]} : vector<8x24xf32> to vector<8x16xf32>
    %247 = vector.extract_strided_slice %239 {offsets = [0, 16], sizes = [8, 8], strides = [1, 1]} : vector<8x24xf32> to vector<8x8xf32>
    %248 = arith.mulf %241, %214 : vector<8x16xf32>
    %249 = arith.mulf %240, %246 : vector<8x16xf32>
    %250 = arith.addf %248, %249 : vector<8x16xf32>
    %251 = math.tanh %250 : vector<8x16xf32>
    %252 = arith.mulf %242, %251 : vector<8x16xf32>
    %253 = arith.mulf %244, %224 : vector<8x8xf32>
    %254 = arith.mulf %243, %247 : vector<8x8xf32>
    %255 = arith.addf %253, %254 : vector<8x8xf32>
    %256 = math.tanh %255 : vector<8x8xf32>
    %257 = arith.mulf %245, %256 : vector<8x8xf32>
    %c1_i32_44 = arith.constant 1 : i32
    %258 = arith.cmpi sge, %225, %c1_i32_44 : i32
    %259 = arith.select %258, %257, %223 : vector<8x8xf32>
    %260 = arith.select %258, %255, %224 : vector<8x8xf32>
    %c7_i32 = arith.constant 7 : i32
    %261 = arith.addi %4, %c7_i32 : i32
    %262 = tpu.concatenate %252, %259 in 1 : vector<8x16xf32>, vector<8x8xf32> -> vector<8x24xf32>
    %263 = arith.index_cast %c7_i32 : i32 to index
    %c0_45 = arith.constant 0 : index
    %c0_46 = arith.constant 0 : index
    %264 = vector.load %arg2[%263, %c0_45, %c0_46] : memref<8x8x128xf32, #tpu.memory_space<vmem>>, vector<1x8x128xf32>
    %265 = vector.shape_cast %264 : vector<1x8x128xf32> to vector<8x128xf32>
    %cst_47 = arith.constant dense<0.000000e+00> : vector<8x128xf32>
    %266 = tpu.matmul %262, %3, %cst_47 {dimension_numbers = #tpu.dot_dimension_numbers<[1], [0], [0], [1], [0, 0, 1, 1], [], []>} : vector<8x24xf32>, vector<24x128xf32>, vector<8x128xf32> -> vector<8x128xf32>
    %267 = arith.addf %265, %266 : vector<8x128xf32>
    %268 = vector.extract_strided_slice %267 {offsets = [0, 0], sizes = [8, 72], strides = [1, 1]} : vector<8x128xf32> to vector<8x72xf32>
    %269 = arith.negf %268 : vector<8x72xf32>
    %270 = math.exp %269 : vector<8x72xf32>
    %cst_48 = arith.constant 1.000000e+00 : f32
    %271 = vector.broadcast %cst_48 : f32 to vector<8x72xf32>
    %272 = arith.addf %271, %270 : vector<8x72xf32>
    %273 = arith.divf %271, %272 : vector<8x72xf32>
    %274 = vector.extract_strided_slice %267 {offsets = [0, 72], sizes = [8, 24], strides = [1, 1]} : vector<8x128xf32> to vector<8x24xf32>
    %275 = math.tanh %274 : vector<8x24xf32>
    %276 = vector.extract_strided_slice %273 {offsets = [0, 0], sizes = [8, 16], strides = [1, 1]} : vector<8x72xf32> to vector<8x16xf32>
    %277 = vector.extract_strided_slice %273 {offsets = [0, 16], sizes = [8, 16], strides = [1, 1]} : vector<8x72xf32> to vector<8x16xf32>
    %278 = vector.extract_strided_slice %273 {offsets = [0, 32], sizes = [8, 16], strides = [1, 1]} : vector<8x72xf32> to vector<8x16xf32>
    %279 = vector.extract_strided_slice %273 {offsets = [0, 48], sizes = [8, 8], strides = [1, 1]} : vector<8x72xf32> to vector<8x8xf32>
    %280 = vector.extract_strided_slice %273 {offsets = [0, 56], sizes = [8, 8], strides = [1, 1]} : vector<8x72xf32> to vector<8x8xf32>
    %281 = vector.extract_strided_slice %273 {offsets = [0, 64], sizes = [8, 8], strides = [1, 1]} : vector<8x72xf32> to vector<8x8xf32>
    %282 = vector.extract_strided_slice %275 {offsets = [0, 0], sizes = [8, 16], strides = [1, 1]} : vector<8x24xf32> to vector<8x16xf32>
    %283 = vector.extract_strided_slice %275 {offsets = [0, 16], sizes = [8, 8], strides = [1, 1]} : vector<8x24xf32> to vector<8x8xf32>
    %284 = arith.mulf %277, %250 : vector<8x16xf32>
    %285 = arith.mulf %276, %282 : vector<8x16xf32>
    %286 = arith.addf %284, %285 : vector<8x16xf32>
    %287 = math.tanh %286 : vector<8x16xf32>
    %288 = arith.mulf %278, %287 : vector<8x16xf32>
    %289 = arith.mulf %280, %260 : vector<8x8xf32>
    %290 = arith.mulf %279, %283 : vector<8x8xf32>
    %291 = arith.addf %289, %290 : vector<8x8xf32>
    %292 = math.tanh %291 : vector<8x8xf32>
    %293 = arith.mulf %281, %292 : vector<8x8xf32>
    %c1_i32_49 = arith.constant 1 : i32
    %294 = arith.cmpi sge, %261, %c1_i32_49 : i32
    %295 = arith.select %294, %293, %259 : vector<8x8xf32>
    %296 = arith.select %294, %291, %260 : vector<8x8xf32>
    %c8_i32_50 = arith.constant 8 : i32
    %c0_51 = arith.constant 0 : index
    %c0_52 = arith.constant 0 : index
    %297 = vector.load %arg8[%c0_51, %c0_52] : memref<8x16xf32, #tpu.memory_space<vmem>>, vector<8x16xf32>
    tpu.vector_store %arg8[%c0_51, %c0_52], %288 {strides = array<i32>} : memref<8x16xf32, #tpu.memory_space<vmem>>, vector<8x16xf32>,
    %c0_53 = arith.constant 0 : index
    %c0_54 = arith.constant 0 : index
    %298 = vector.load %arg9[%c0_53, %c0_54] : memref<8x16xf32, #tpu.memory_space<vmem>>, vector<8x16xf32>
    tpu.vector_store %arg9[%c0_53, %c0_54], %286 {strides = array<i32>} : memref<8x16xf32, #tpu.memory_space<vmem>>, vector<8x16xf32>,
    %c0_55 = arith.constant 0 : index
    %c0_56 = arith.constant 0 : index
    %299 = vector.load %arg10[%c0_55, %c0_56] : memref<8x8xf32, #tpu.memory_space<vmem>>, vector<8x8xf32>
    tpu.vector_store %arg10[%c0_55, %c0_56], %295 {strides = array<i32>} : memref<8x8xf32, #tpu.memory_space<vmem>>, vector<8x8xf32>,
    %c0_57 = arith.constant 0 : index
    %c0_58 = arith.constant 0 : index
    %300 = vector.load %arg11[%c0_57, %c0_58] : memref<8x8xf32, #tpu.memory_space<vmem>>, vector<8x8xf32>
    tpu.vector_store %arg11[%c0_57, %c0_58], %296 {strides = array<i32>} : memref<8x8xf32, #tpu.memory_space<vmem>>, vector<8x8xf32>,
    %c0_i32_59 = arith.constant 0 : i32
    %301 = arith.cmpi eq, %arg1, %c0_i32_59 : i32
    %302 = arith.extui %301 : i1 to i32
    %c0_i32_60 = arith.constant 0 : i32
    %303 = arith.cmpi ne, %302, %c0_i32_60 : i32
    scf.if %303 {
      %304 = tpu.concatenate %288, %295 in 1 : vector<8x16xf32>, vector<8x8xf32> -> vector<8x24xf32>
      %cst_61 = arith.constant dense<0.000000e+00> : vector<8x128xf32>
      %305 = tpu.matmul %304, %3, %cst_61 {dimension_numbers = #tpu.dot_dimension_numbers<[1], [0], [0], [1], [0, 0, 1, 1], [], []>} : vector<8x24xf32>, vector<24x128xf32>, vector<8x128xf32> -> vector<8x128xf32>
      %c0_62 = arith.constant 0 : index
      %c0_63 = arith.constant 0 : index
      %306 = vector.load %arg4[%c0_62, %c0_63] : memref<1x128xf32, #tpu.memory_space<vmem>>, vector<1x128xf32>
      %307 = vector.broadcast %306 : vector<1x128xf32> to vector<8x128xf32>
      %308 = arith.addf %305, %307 : vector<8x128xf32>
      %309 = vector.extract_strided_slice %308 {offsets = [0, 0], sizes = [8, 72], strides = [1, 1]} : vector<8x128xf32> to vector<8x72xf32>
      %310 = arith.negf %309 : vector<8x72xf32>
      %311 = math.exp %310 : vector<8x72xf32>
      %cst_64 = arith.constant 1.000000e+00 : f32
      %312 = vector.broadcast %cst_64 : f32 to vector<8x72xf32>
      %313 = arith.addf %312, %311 : vector<8x72xf32>
      %314 = arith.divf %312, %313 : vector<8x72xf32>
      %315 = vector.extract_strided_slice %308 {offsets = [0, 72], sizes = [8, 24], strides = [1, 1]} : vector<8x128xf32> to vector<8x24xf32>
      %316 = math.tanh %315 : vector<8x24xf32>
      %317 = vector.extract_strided_slice %314 {offsets = [0, 48], sizes = [8, 8], strides = [1, 1]} : vector<8x72xf32> to vector<8x8xf32>
      %318 = vector.extract_strided_slice %314 {offsets = [0, 56], sizes = [8, 8], strides = [1, 1]} : vector<8x72xf32> to vector<8x8xf32>
      %319 = vector.extract_strided_slice %314 {offsets = [0, 64], sizes = [8, 8], strides = [1, 1]} : vector<8x72xf32> to vector<8x8xf32>
      %320 = vector.extract_strided_slice %316 {offsets = [0, 16], sizes = [8, 8], strides = [1, 1]} : vector<8x24xf32> to vector<8x8xf32>
      %321 = arith.mulf %318, %296 : vector<8x8xf32>
      %322 = arith.mulf %317, %320 : vector<8x8xf32>
      %323 = arith.addf %321, %322 : vector<8x8xf32>
      %324 = math.tanh %323 : vector<8x8xf32>
      %325 = arith.mulf %319, %324 : vector<8x8xf32>
      %c0_65 = arith.constant 0 : index
      %c0_66 = arith.constant 0 : index
      %326 = vector.load %arg5[%c0_65, %c0_66] : memref<8x1xf32, #tpu.memory_space<vmem>>, vector<8x1xf32>
      %cst_67 = arith.constant dense<0.000000e+00> : vector<8x1xf32>
      %327 = tpu.matmul %325, %326, %cst_67 {dimension_numbers = #tpu.dot_dimension_numbers<[1], [0], [0], [1], [0, 0, 1, 1], [], []>} : vector<8x8xf32>, vector<8x1xf32>, vector<8x1xf32> -> vector<8x1xf32>
      %c0_68 = arith.constant 0 : index
      %c0_69 = arith.constant 0 : index
      %328 = vector.load %arg6[%c0_68, %c0_69] : memref<1x1xf32, #tpu.memory_space<vmem>>, vector<1x1xf32>
      %329 = vector.broadcast %328 : vector<1x1xf32> to vector<8x1xf32>
      %330 = arith.addf %327, %329 : vector<8x1xf32>
      %c0_70 = arith.constant 0 : index
      %c0_71 = arith.constant 0 : index
      %331 = vector.load %arg7[%c0_70, %c0_71] : memref<8x1xf32, #tpu.memory_space<vmem>>, vector<8x1xf32>
      tpu.vector_store %arg7[%c0_70, %c0_71], %330 {strides = array<i32>} : memref<8x1xf32, #tpu.memory_space<vmem>>, vector<8x1xf32>,
    } else {
    }
    return
  }
  func.func @transform_0(%arg0: i32, %arg1: i32) -> (i32, i32, i32) {
    %c0_i32 = arith.constant 0 : i32
    %c0_i32_0 = arith.constant 0 : i32
    return %arg1, %arg0, %c0_i32 : i32, i32, i32
  }
  func.func @transform_1(%arg0: i32, %arg1: i32) -> (i32, i32) {
    %c0_i32 = arith.constant 0 : i32
    %c0_i32_0 = arith.constant 0 : i32
    %c0_i32_1 = arith.constant 0 : i32
    return %c0_i32, %c0_i32_0 : i32, i32
  }
  func.func @transform_2(%arg0: i32, %arg1: i32) -> (i32, i32) {
    %c0_i32 = arith.constant 0 : i32
    %c0_i32_0 = arith.constant 0 : i32
    %c0_i32_1 = arith.constant 0 : i32
    return %c0_i32, %c0_i32_0 : i32, i32
  }
  func.func @transform_3(%arg0: i32, %arg1: i32) -> (i32, i32) {
    %c0_i32 = arith.constant 0 : i32
    %c0_i32_0 = arith.constant 0 : i32
    %c0_i32_1 = arith.constant 0 : i32
    return %c0_i32, %c0_i32_0 : i32, i32
  }
  func.func @transform_4(%arg0: i32, %arg1: i32) -> (i32, i32) {
    %c0_i32 = arith.constant 0 : i32
    %c0_i32_0 = arith.constant 0 : i32
    %c0_i32_1 = arith.constant 0 : i32
    return %c0_i32, %c0_i32_0 : i32, i32
  }
  func.func @transform_5(%arg0: i32, %arg1: i32) -> (i32, i32) {
    %c0_i32 = arith.constant 0 : i32
    %c0_i32_0 = arith.constant 0 : i32
    return %arg0, %c0_i32 : i32, i32
  }
}

</mosaic_0001>

<bundles_post_ra>
// kernel: tpu_custom_call.1
= control target key start
LH: loop header
LB: loop body
LE: loop exit
PB: predicated region body
PF: predicated region fallthrough
CT: control target
= control target key end

     0   :  { %s1305_s0 = inlined_call_operand.hbm [shape: f32[8,8,128], index: 0, kind: input, shape index: {}]   ;;  %s1306_s1 = inlined_call_operand.hbm [shape: f32[24,128], index: 1, kind: input, shape index: {}]   ;;  %s1307_s2 = inlined_call_operand.vmem [shape: f32[1,128], index: 2, kind: input, shape index: {}]   ;;  %s1308_s3 = inlined_call_operand.vmem [shape: f32[8,1], index: 3, kind: input, shape index: {}]   ;;  %s1309_s4 = inlined_call_operand.<no memory space> [shape: f32[1,1], index: 4, kind: input, shape index: {}]   ;;  %s1310_s5 = inlined_call_operand.vmem [shape: f32[8,1], index: 5, kind: output, shape index: {}]  }
   0x1   :  { %v10_v0 = vstv %s1309_s4 }
   0x2   :  { %11 = vst [vmem:[#allocation6] sm:$0x1] %v10_v0 }
   0x3   :  { %12 = vsyncpa [#allocation8], 0  ;;  %s18_s22 = sshll.u32 %s1305_s0, 4  ;;  %s19_s22 = int_to_ptr.hbm [resolvable:$true] %s18_s22 }
   0x4   :  { %13 = vsyncpa [#allocation10], 0  ;;  %s1141_s23 = smov [#allocation7]   ;;  %s31_s27 = sshll.u32 %s1306_s1, 4  ;;  %s32_s27 = int_to_ptr.hbm [resolvable:$true] %s31_s27 }
   0x5   :  { %s20_s24 = sshll.u32 %s1141_s23, 4  ;;  %s1142_s28 = smov 128   ;;  %s21_s24 = int_to_ptr.vmem [resolvable:$true] %s20_s24 }
   0x6   :  { %s1143_s29 = smov 8   ;;  %s1144_s4 = smov [#allocation9]  }
   0x7   :  { %26 = dma.hbm_to_vmem [thread:$0]  %s19_s22, 1024, %s21_s24, [#allocation8], %s1142_s28, %s1142_s28, %s1143_s29  }
   0x8   :  { %s33_s30 = sshll.u32 %s1144_s4, 4  ;;  %s34_s30 = int_to_ptr.vmem [resolvable:$true] %s33_s30 }
   0x9   :  { %39 = dma.hbm_to_vmem [thread:$0]  %s32_s27, 384, %s34_s30, [#allocation10], %s1142_s28, %s1142_s28, %s1143_s29  }
   0xa   :  { %1137 = dma.done.wait [#allocation8], 1024  }
   0xb   :  { %1138 = vsyncadd [#allocation8], 4294966272 }
   0xc   :  { %1139 = dma.done.wait [#allocation10], 384  }
   0xd   :  { %1140 = vsyncadd [#allocation10], 4294966912  ;;  %vm61_vm0 = vcmask 64512   ;;  %v1145_v1 = vmov 0.0   ;;  %v66_v2 = vld [vmem:[#allocation9 + $0x10] sm:$0xff]  ;;  %v65_v3 = vld [vmem:[#allocation9 + $0x8] sm:$0xff] }
   0xe   :  { %62 = vst.msk [vmem:[#allocation4] sm:$0xff] %vm61_vm0, %v1145_v1  ;;  %96 = vmatpush.msra.mxu0 %v66_v2  ;;  %202 = vmatpush.msra.mxu1 %v66_v2  ;;  %s1146_s0 = smov 16   ;;  %vm58_vm1 = vcmask 130048   ;;  %v64_v5 = vld [vmem:[#allocation9] sm:$0xff]  ;;  %vm79_vm2 = vcmask 195584   ;;  %s1147_s1 = smov 56  }
   0xf   :  { %63 = vst.msk [vmem:[#allocation5] sm:$0xff] %vm61_vm0, %v1145_v1  ;;  %297 = vmatpush.msra.mxu2 %v66_v2  ;;  %392 = vmatpush.msra.mxu3 %v66_v2  ;;  %v78_v10 = vld [vmem:[#allocation7] sm:$0xff]  ;;  %s1148_s6 = smov 64   ;;  %s1149_s7 = smov 96   ;;  %v185_v41 = vld [vmem:[#allocation7 + $0x8] sm:$0xff] }
  0x10   :  { %97 = vmatpush.msra.mxu0 %v65_v3  ;;  %203 = vmatpush.msra.mxu1 %v65_v3  ;;  %59 = vst.msk [vmem:[#allocation2] sm:$0xff] %vm58_vm1, %v1145_v1  ;;  %s1150_s8 = smov 80   ;;  %s1151_s9 = smov 88  }
  0x11   :  { %298 = vmatpush.msra.mxu2 %v65_v3  ;;  %393 = vmatpush.msra.mxu3 %v65_v3  ;;  %60 = vst.msk [vmem:[#allocation3] sm:$0xff] %vm58_vm1, %v1145_v1  ;;  %s1153_s14 = smov 72  }
  0x12   :  { %98 = vmatpush.msra.mxu0 %v64_v5  ;;  %204 = vmatpush.msra.mxu1 %v64_v5 }
  0x13   :  { %299 = vmatpush.msra.mxu2 %v64_v5  ;;  %394 = vmatpush.msra.mxu3 %v64_v5 }
  0x14   :  { %487 = vmatpush.msrb.mxu0 %v66_v2  ;;  %582 = vmatpush.msrb.mxu1 %v66_v2 }
  0x15   :  { %v1197_v4 = vld [vmem:[#allocation4] sm:$0xff]  ;;  %677 = vmatpush.msrb.mxu2 %v66_v2  ;;  %772 = vmatpush.msrb.mxu3 %v66_v2 }
  0x16   :  { %73 = vrot.lane.b32.xlu0 %v1197_v4, %s1146_s0  ;;  %488 = vmatpush.msrb.mxu0 %v65_v3  ;;  %v71_v37 = vld [vmem:[#allocation5] sm:$0xff] }
  0x17   :  { %583 = vmatpush.msrb.mxu1 %v65_v3  ;;  %678 = vmatpush.msrb.mxu2 %v65_v3  ;;  %v68_v7 = vld [vmem:[#allocation2] sm:$0xff] }
  0x18   :  { %v69_v6 = vld [vmem:[#allocation3] sm:$0xff]  ;;  %489 = vmatpush.msrb.mxu0 %v64_v5  ;;  %773 = vmatpush.msrb.mxu3 %v65_v3 }
  0x19   :  { %125 = vrot.lane.b32.xlu1 %v69_v6, %s1146_s0  ;;  %584 = vmatpush.msrb.mxu1 %v64_v5 }
  0x1a   :  { %679 = vmatpush.msrb.mxu2 %v64_v5  ;;  %774 = vmatpush.msrb.mxu3 %v64_v5 }
  0x88   :  { %v74_v8 = vpop.permute.xlu0 %73 }
  0x89   :  { %v77_v9 = vsel %vm58_vm1, %v68_v7, %v74_v8 }
  0x8a   :  { %969 = vmatmul.msk.f32.vlgmr.msra.gmra.mxu0 %vm79_vm2, %v77_v9 }
  0x8b   :  { %887 = vmatpush.msra.mxu0 %v66_v2  ;;  %v126_v29 = vpop.permute.xlu1 %125 }
  0x8d   :  { %888 = vmatpush.msra.mxu0 %v65_v3 }
  0x8f   :  { %889 = vmatpush.msra.mxu0 %v64_v5 }
 0x107   :  { %v100_v11 = vpop.f32.mrf.mxu0 }
 0x108   :  { %v103_v12 = vadd.f32 %v100_v11, %v78_v10 }
 0x10a   :  { %1003 = vtanh.f32 %v103_v12  ;;  %v970_v14 = vmul.f32 -1.442695, %v103_v12 }
 0x10c   :  { %1005 = vpow2.f32 %v970_v14  ;;  %v280_v14 = vld [vmem:[#allocation7 + $0x10] sm:$0xff] }
 0x110   :  { %v1004_v13 = vpop.eup %1003 }
 0x111   :  { %130 = vrot.lane.b32.xlu0 %v1004_v13, %s1147_s1 }
 0x112   :  { %v1006_v15 = vpop.eup %1005 }
 0x113   :  { %v107_v16 = vadd.f32 1.0, %v1006_v15 }
 0x115   :  { %1007 = vrcp.f32 %v107_v16  ;;  %v119_v22 = vand.u32 2147483648, %v107_v16  ;;  %vm113_vm4 = vweird.f32 %v107_v16  ;;  %v117_v23 = vand.u32 2147483647, %v107_v16 }
 0x117   :  { %v120_v25 = vor.u32 1.1754944e-38, %v119_v22  ;;  %vm118_vm6 = vcmp.eq.f32.partialorder %v117_v23, 8.507059e+37 }
 0x11b   :  { %v1008_v17 = vpop.eup %1007 }
 0x11c   :  { %v109_v18 = vmul.f32 %v1008_v17, %v107_v16  ;;  %vm114_vm3 = vweird.f32 %v1008_v17 }
 0x11d   :  { %vm115_vm5 = vmor %vm113_vm4, %vm114_vm3 }
 0x11e   :  { %v110_v19 = vsub.f32 1.0, %v109_v18 }
 0x120   :  { %v111_v20 = vmul.f32 %v1008_v17, %v110_v19 }
 0x122   :  { %v112_v21 = vadd.f32 %v1008_v17, %v111_v20 }
 0x124   :  { %v116_v24 = vsel %vm115_vm5, %v1008_v17, %v112_v21 }
 0x125   :  { %v121_v26 = vsel %vm118_vm6, %v120_v25, %v116_v24 }
 0x126   :  { %v128_v30 = vmul.f32 %v126_v29, %v121_v26 }
 0x183   :  { %v131_v27 = vpop.permute.xlu0 %130 }
 0x184   :  { %v133_v28 = vmul.f32 %v131_v27, %v121_v26 }
 0x186   :  { %135 = vrot.lane.b32.xlu1 %v133_v28, %s1146_s0 }
 0x1f8   :  { %v136_v31 = vpop.permute.xlu1 %135 }
 0x1f9   :  { %v138_v32 = vadd.f32 %v136_v31, %v128_v30 }
 0x1fb   :  { %1009 = vtanh.f32 %v138_v32 }
 0x201   :  { %v1010_v33 = vpop.eup %1009 }
 0x202   :  { %141 = vrot.lane.b32.xlu2 %v1010_v33, %s1146_s0 }
 0x20a   :  { %169 = vrot.lane.b32.xlu2 %v1197_v4, %s1148_s6 }
 0x25c   :  { %v142_v34 = vpop.permute.xlu2 %141 }
 0x25d   :  { %v144_v35 = vmul.f32 %v142_v34, %v121_v26 }
 0x25f   :  { %176 = vrot.lane.b32.xlu0 %v144_v35, %s1149_s7 }
 0x264   :  { %v170_v36 = vpop.permute.xlu2 %169 }
 0x265   :  { %180 = vrot.lane.b32.xlu1 %v170_v36, %s1150_s8 }
 0x26d   :  { %146 = vrot.lane.b32.xlu1 %v71_v37, %s1147_s1 }
 0x2d1   :  { %v177_v38 = vpop.permute.xlu0 %176 }
 0x2d7   :  { %v181_v39 = vpop.permute.xlu1 %180 }
 0x2d8   :  { %v183_v40 = vsel %vm58_vm1, %v177_v38, %v181_v39 }
 0x2d9   :  { %971 = vmatmul.msk.f32.vlgmr.msra.gmra.mxu1 %vm79_vm2, %v183_v40 }
 0x2df   :  { %v147_v2 = vpop.permute.xlu1 %146 }
 0x356   :  { %v206_v42 = vpop.f32.mrf.mxu1 }
 0x357   :  { %v209_v43 = vadd.f32 %v206_v42, %v185_v41 }
 0x359   :  { %1011 = vtanh.f32 %v209_v43  ;;  %v972_v45 = vmul.f32 -1.442695, %v209_v43 }
 0x35b   :  { %1013 = vpow2.f32 %v972_v45 }
 0x35f   :  { %v1012_v44 = vpop.eup %1011 }
 0x360   :  { %248 = vrot.lane.b32.xlu0 %v1012_v44, %s1151_s9  ;;  %232 = vrot.lane.b32.xlu2 %v1012_v44, %s1147_s1 }
 0x361   :  { %v1014_v46 = vpop.eup %1013 }
 0x362   :  { %v213_v47 = vadd.f32 1.0, %v1014_v46 }
 0x364   :  { %1015 = vrcp.f32 %v213_v47  ;;  %v225_v53 = vand.u32 2147483648, %v213_v47  ;;  %vm219_vm8 = vweird.f32 %v213_v47  ;;  %v223_v54 = vand.u32 2147483647, %v213_v47 }
 0x366   :  { %v226_v56 = vor.u32 1.1754944e-38, %v225_v53  ;;  %vm224_vm10 = vcmp.eq.f32.partialorder %v223_v54, 8.507059e+37 }
 0x36a   :  { %v1016_v48 = vpop.eup %1015 }
 0x36b   :  { %v215_v49 = vmul.f32 %v1016_v48, %v213_v47  ;;  %vm220_vm7 = vweird.f32 %v1016_v48 }
 0x36c   :  { %vm221_vm9 = vmor %vm219_vm8, %vm220_vm7 }
 0x36d   :  { %v216_v50 = vsub.f32 1.0, %v215_v49 }
 0x36f   :  { %v217_v51 = vmul.f32 %v1016_v48, %v216_v50  ;;  %v375_v50 = vld [vmem:[#allocation7 + $0x18] sm:$0xff] }
 0x371   :  { %v218_v52 = vadd.f32 %v1016_v48, %v217_v51 }
 0x373   :  { %v222_v55 = vsel %vm221_vm9, %v1016_v48, %v218_v52 }
 0x374   :  { %v227_v57 = vsel %vm224_vm10, %v226_v56, %v222_v55 }
 0x375   :  { %v230_v62 = vmul.f32 %v227_v57, %v138_v32  ;;  %v247_v3 = vmul.f32 %v227_v57, %v147_v2 }
 0x3ba   :  { %v233_v58 = vpop.permute.xlu2 %232 }
 0x3bb   :  { %v235_v59 = vmul.f32 %v233_v58, %v227_v57 }
 0x3bd   :  { %237 = vrot.lane.b32.xlu2 %v235_v59, %s1146_s0 }
 0x3d2   :  { %v249_v60 = vpop.permute.xlu0 %248 }
 0x3d3   :  { %v251_v61 = vmul.f32 %v249_v60, %v227_v57 }
 0x3d5   :  { %253 = vrot.lane.b32.xlu0 %v251_v61, %s1143_s29 }
 0x417   :  { %v238_v63 = vpop.permute.xlu2 %237 }
 0x418   :  { %v240_v0 = vadd.f32 %v238_v63, %v230_v62 }
 0x41a   :  { %1017 = vtanh.f32 %v240_v0 }
 0x420   :  { %v1018_v1 = vpop.eup %1017 }
 0x421   :  { %243 = vrot.lane.b32.xlu1 %v1018_v1, %s1146_s0 }
 0x447   :  { %v254_v4 = vpop.permute.xlu0 %253 }
 0x448   :  { %v256_v5 = vadd.f32 %v254_v4, %v247_v3 }
 0x44a   :  { %1019 = vtanh.f32 %v256_v5 }
 0x450   :  { %v1020_v6 = vpop.eup %1019 }
 0x451   :  { %259 = vrot.lane.b32.xlu2 %v1020_v6, %s1143_s29 }
 0x493   :  { %v244_v7 = vpop.permute.xlu1 %243 }
 0x494   :  { %v246_v8 = vmul.f32 %v244_v7, %v227_v57 }
 0x496   :  { %271 = vrot.lane.b32.xlu0 %v246_v8, %s1149_s7 }
 0x4ab   :  { %v260_v9 = vpop.permute.xlu2 %259 }
 0x4ac   :  { %v262_v10 = vmul.f32 %v260_v9, %v227_v57 }
 0x4ae   :  { %275 = vrot.lane.b32.xlu1 %v262_v10, %s1150_s8 }
 0x508   :  { %v272_v11 = vpop.permute.xlu0 %271 }
 0x520   :  { %v276_v12 = vpop.permute.xlu1 %275 }
 0x521   :  { %v278_v13 = vsel %vm58_vm1, %v272_v11, %v276_v12 }
 0x522   :  { %973 = vmatmul.msk.f32.vlgmr.msra.gmra.mxu2 %vm79_vm2, %v278_v13 }
 0x5a5   :  { %v301_v15 = vpop.f32.mrf.mxu2 }
 0x5a6   :  { %v304_v16 = vadd.f32 %v301_v15, %v280_v14 }
 0x5a8   :  { %1021 = vtanh.f32 %v304_v16  ;;  %v974_v18 = vmul.f32 -1.442695, %v304_v16 }
 0x5aa   :  { %1023 = vpow2.f32 %v974_v18 }
 0x5ae   :  { %v1022_v17 = vpop.eup %1021 }
 0x5af   :  { %343 = vrot.lane.b32.xlu0 %v1022_v17, %s1151_s9  ;;  %327 = vrot.lane.b32.xlu2 %v1022_v17, %s1147_s1 }
 0x5b0   :  { %v1024_v19 = vpop.eup %1023 }
 0x5b1   :  { %v308_v20 = vadd.f32 1.0, %v1024_v19 }
 0x5b3   :  { %1025 = vrcp.f32 %v308_v20  ;;  %v320_v26 = vand.u32 2147483648, %v308_v20  ;;  %vm314_vm12 = vweird.f32 %v308_v20  ;;  %v318_v27 = vand.u32 2147483647, %v308_v20 }
 0x5b5   :  { %v321_v29 = vor.u32 1.1754944e-38, %v320_v26  ;;  %vm319_vm14 = vcmp.eq.f32.partialorder %v318_v27, 8.507059e+37 }
 0x5b9   :  { %v1026_v21 = vpop.eup %1025 }
 0x5ba   :  { %v310_v22 = vmul.f32 %v1026_v21, %v308_v20  ;;  %vm315_vm11 = vweird.f32 %v1026_v21 }
 0x5bb   :  { %vm316_vm13 = vmor %vm314_vm12, %vm315_vm11 }
 0x5bc   :  { %v311_v23 = vsub.f32 1.0, %v310_v22  ;;  %v470_v22 = vld [vmem:[#allocation7 + $0x20] sm:$0xff] }
 0x5be   :  { %v312_v24 = vmul.f32 %v1026_v21, %v311_v23 }
 0x5c0   :  { %v313_v25 = vadd.f32 %v1026_v21, %v312_v24 }
 0x5c2   :  { %v317_v28 = vsel %vm316_vm13, %v1026_v21, %v313_v25 }
 0x5c3   :  { %v322_v31 = vsel %vm319_vm14, %v321_v29, %v317_v28 }
 0x5c4   :  { %v342_v35 = vmul.f32 %v322_v31, %v256_v5  ;;  %v325_v36 = vmul.f32 %v322_v31, %v240_v0 }
 0x609   :  { %v328_v30 = vpop.permute.xlu2 %327 }
 0x60a   :  { %v330_v32 = vmul.f32 %v328_v30, %v322_v31 }
 0x60c   :  { %332 = vrot.lane.b32.xlu1 %v330_v32, %s1146_s0 }
 0x621   :  { %v344_v33 = vpop.permute.xlu0 %343 }
 0x622   :  { %v346_v34 = vmul.f32 %v344_v33, %v322_v31 }
 0x624   :  { %348 = vrot.lane.b32.xlu2 %v346_v34, %s1143_s29 }
 0x67e   :  { %v349_v37 = vpop.permute.xlu2 %348  ;;  %v333_v38 = vpop.permute.xlu1 %332 }
 0x67f   :  { %v351_v39 = vadd.f32 %v349_v37, %v342_v35  ;;  %v335_v40 = vadd.f32 %v333_v38, %v325_v36 }
 0x681   :  { %1027 = vtanh.f32 %v351_v39 }
 0x682   :  { %1029 = vtanh.f32 %v335_v40 }
 0x687   :  { %v1028_v41 = vpop.eup %1027 }
 0x688   :  { %v1030_v42 = vpop.eup %1029  ;;  %354 = vrot.lane.b32.xlu1 %v1028_v41, %s1143_s29 }
 0x689   :  { %338 = vrot.lane.b32.xlu0 %v1030_v42, %s1146_s0 }
 0x6fa   :  { %v355_v43 = vpop.permute.xlu1 %354 }
 0x6fb   :  { %v357_v44 = vmul.f32 %v355_v43, %v322_v31  ;;  %v339_v45 = vpop.permute.xlu0 %338 }
 0x6fc   :  { %v341_v46 = vmul.f32 %v339_v45, %v322_v31 }
 0x6fd   :  { %370 = vrot.lane.b32.xlu0 %v357_v44, %s1150_s8 }
 0x6fe   :  { %366 = vrot.lane.b32.xlu2 %v341_v46, %s1149_s7 }
 0x758   :  { %v367_v47 = vpop.permute.xlu2 %366 }
 0x76f   :  { %v371_v48 = vpop.permute.xlu0 %370 }
 0x770   :  { %v373_v49 = vsel %vm58_vm1, %v367_v47, %v371_v48 }
 0x771   :  { %975 = vmatmul.msk.f32.vlgmr.msra.gmra.mxu3 %vm79_vm2, %v373_v49 }
 0x7f4   :  { %v396_v51 = vpop.f32.mrf.mxu3 }
 0x7f5   :  { %v399_v52 = vadd.f32 %v396_v51, %v375_v50 }
 0x7f7   :  { %1031 = vtanh.f32 %v399_v52  ;;  %v976_v54 = vmul.f32 -1.442695, %v399_v52 }
 0x7f9   :  { %1033 = vpow2.f32 %v976_v54 }
 0x7fd   :  { %v1032_v53 = vpop.eup %1031 }
 0x7fe   :  { %438 = vrot.lane.b32.xlu2 %v1032_v53, %s1151_s9  ;;  %422 = vrot.lane.b32.xlu1 %v1032_v53, %s1147_s1 }
 0x7ff   :  { %v1034_v55 = vpop.eup %1033 }
 0x800   :  { %v403_v56 = vadd.f32 1.0, %v1034_v55 }
 0x802   :  { %1035 = vrcp.f32 %v403_v56  ;;  %v415_v62 = vand.u32 2147483648, %v403_v56  ;;  %vm409_vm3 = vweird.f32 %v403_v56  ;;  %v413_v63 = vand.u32 2147483647, %v403_v56 }
 0x804   :  { %v416_v1 = vor.u32 1.1754944e-38, %v415_v62  ;;  %vm414_vm5 = vcmp.eq.f32.partialorder %v413_v63, 8.507059e+37 }
 0x808   :  { %v1036_v57 = vpop.eup %1035 }
 0x809   :  { %v405_v58 = vmul.f32 %v1036_v57, %v403_v56  ;;  %vm410_vm15 = vweird.f32 %v1036_v57 }
 0x80a   :  { %vm411_vm4 = vmor %vm409_vm3, %vm410_vm15 }
 0x80b   :  { %v406_v59 = vsub.f32 1.0, %v405_v58  ;;  %v565_v58 = vld [vmem:[#allocation7 + $0x28] sm:$0xff] }
 0x80d   :  { %v407_v60 = vmul.f32 %v1036_v57, %v406_v59 }
 0x80f   :  { %v408_v61 = vadd.f32 %v1036_v57, %v407_v60 }
 0x811   :  { %v412_v0 = vsel %vm411_vm4, %v1036_v57, %v408_v61 }
 0x812   :  { %v417_v3 = vsel %vm414_vm5, %v416_v1, %v412_v0 }
 0x813   :  { %v437_v7 = vmul.f32 %v417_v3, %v351_v39  ;;  %v420_v11 = vmul.f32 %v417_v3, %v335_v40 }
 0x858   :  { %v439_v2 = vpop.permute.xlu2 %438 }
 0x859   :  { %v441_v4 = vmul.f32 %v439_v2, %v417_v3 }
 0x85b   :  { %443 = vrot.lane.b32.xlu1 %v441_v4, %s1143_s29 }
 0x870   :  { %v423_v5 = vpop.permute.xlu1 %422 }
 0x871   :  { %v425_v6 = vmul.f32 %v423_v5, %v417_v3 }
 0x873   :  { %427 = vrot.lane.b32.xlu0 %v425_v6, %s1146_s0 }
 0x8cd   :  { %v444_v8 = vpop.permute.xlu1 %443 }
 0x8ce   :  { %v446_v9 = vadd.f32 %v444_v8, %v437_v7 }
 0x8d0   :  { %1037 = vtanh.f32 %v446_v9 }
 0x8d6   :  { %v1038_v10 = vpop.eup %1037 }
 0x8d7   :  { %449 = vrot.lane.b32.xlu0 %v1038_v10, %s1143_s29 }
 0x8e5   :  { %v428_v12 = vpop.permute.xlu0 %427 }
 0x8e6   :  { %v430_v13 = vadd.f32 %v428_v12, %v420_v11 }
 0x8e8   :  { %1039 = vtanh.f32 %v430_v13 }
 0x8ee   :  { %v1040_v14 = vpop.eup %1039 }
 0x8ef   :  { %433 = vrot.lane.b32.xlu2 %v1040_v14, %s1146_s0 }
 0x949   :  { %v450_v15 = vpop.permute.xlu0 %449  ;;  %v434_v16 = vpop.permute.xlu2 %433 }
 0x94a   :  { %v452_v17 = vmul.f32 %v450_v15, %v417_v3  ;;  %v436_v18 = vmul.f32 %v434_v16, %v417_v3 }
 0x94c   :  { %465 = vrot.lane.b32.xlu2 %v452_v17, %s1150_s8  ;;  %461 = vrot.lane.b32.xlu1 %v436_v18, %s1149_s7 }
 0x9a6   :  { %v466_v19 = vpop.permute.xlu2 %465 }
 0x9be   :  { %v462_v20 = vpop.permute.xlu1 %461 }
 0x9bf   :  { %v468_v21 = vsel %vm58_vm1, %v462_v20, %v466_v19 }
 0x9c0   :  { %977 = vmatmul.msk.f32.vlgmr.msrb.gmra.mxu0 %vm79_vm2, %v468_v21 }
 0xa3d   :  { %v491_v23 = vpop.f32.mrf.mxu0 }
 0xa3e   :  { %v494_v24 = vadd.f32 %v491_v23, %v470_v22 }
 0xa40   :  { %1041 = vtanh.f32 %v494_v24  ;;  %v978_v26 = vmul.f32 -1.442695, %v494_v24 }
 0xa42   :  { %1043 = vpow2.f32 %v978_v26 }
 0xa46   :  { %v1042_v25 = vpop.eup %1041 }
 0xa47   :  { %533 = vrot.lane.b32.xlu1 %v1042_v25, %s1151_s9  ;;  %517 = vrot.lane.b32.xlu0 %v1042_v25, %s1147_s1 }
 0xa48   :  { %v1044_v27 = vpop.eup %1043 }
 0xa49   :  { %v498_v28 = vadd.f32 1.0, %v1044_v27 }
 0xa4b   :  { %1045 = vrcp.f32 %v498_v28  ;;  %v510_v34 = vand.u32 2147483648, %v498_v28  ;;  %vm504_vm7 = vweird.f32 %v498_v28  ;;  %v508_v35 = vand.u32 2147483647, %v498_v28 }
 0xa4d   :  { %v511_v37 = vor.u32 1.1754944e-38, %v510_v34  ;;  %vm509_vm9 = vcmp.eq.f32.partialorder %v508_v35, 8.507059e+37 }
 0xa51   :  { %v1046_v29 = vpop.eup %1045 }
 0xa52   :  { %v500_v30 = vmul.f32 %v1046_v29, %v498_v28  ;;  %vm505_vm6 = vweird.f32 %v1046_v29 }
 0xa53   :  { %vm506_vm8 = vmor %vm504_vm7, %vm505_vm6 }
 0xa54   :  { %v501_v31 = vsub.f32 1.0, %v500_v30  ;;  %v660_v30 = vld [vmem:[#allocation7 + $0x30] sm:$0xff] }
 0xa56   :  { %v502_v32 = vmul.f32 %v1046_v29, %v501_v31 }
 0xa58   :  { %v503_v33 = vadd.f32 %v1046_v29, %v502_v32 }
 0xa5a   :  { %v507_v36 = vsel %vm506_vm8, %v1046_v29, %v503_v33 }
 0xa5b   :  { %v512_v39 = vsel %vm509_vm9, %v511_v37, %v507_v36 }
 0xa5c   :  { %v515_v43 = vmul.f32 %v512_v39, %v430_v13  ;;  %v532_v47 = vmul.f32 %v512_v39, %v446_v9 }
 0xab9   :  { %v534_v38 = vpop.permute.xlu1 %533  ;;  %v518_v40 = vpop.permute.xlu0 %517 }
 0xaba   :  { %v536_v41 = vmul.f32 %v534_v38, %v512_v39  ;;  %v520_v42 = vmul.f32 %v518_v40, %v512_v39 }
 0xabc   :  { %538 = vrot.lane.b32.xlu0 %v536_v41, %s1143_s29  ;;  %522 = vrot.lane.b32.xlu2 %v520_v42, %s1146_s0 }
 0xb16   :  { %v523_v44 = vpop.permute.xlu2 %522 }
 0xb17   :  { %v525_v45 = vadd.f32 %v523_v44, %v515_v43 }
 0xb19   :  { %1047 = vtanh.f32 %v525_v45 }
 0xb1f   :  { %v1048_v46 = vpop.eup %1047 }
 0xb20   :  { %528 = vrot.lane.b32.xlu1 %v1048_v46, %s1146_s0 }
 0xb2e   :  { %v539_v48 = vpop.permute.xlu0 %538 }
 0xb2f   :  { %v541_v49 = vadd.f32 %v539_v48, %v532_v47 }
 0xb31   :  { %1049 = vtanh.f32 %v541_v49 }
 0xb37   :  { %v1050_v50 = vpop.eup %1049 }
 0xb38   :  { %544 = vrot.lane.b32.xlu2 %v1050_v50, %s1143_s29 }
 0xb92   :  { %v545_v51 = vpop.permute.xlu2 %544  ;;  %v529_v52 = vpop.permute.xlu1 %528 }
 0xb93   :  { %v547_v53 = vmul.f32 %v545_v51, %v512_v39  ;;  %v531_v54 = vmul.f32 %v529_v52, %v512_v39 }
 0xb95   :  { %560 = vrot.lane.b32.xlu1 %v547_v53, %s1150_s8  ;;  %556 = vrot.lane.b32.xlu0 %v531_v54, %s1149_s7 }
 0xc07   :  { %v557_v55 = vpop.permute.xlu0 %556  ;;  %v561_v56 = vpop.permute.xlu1 %560 }
 0xc08   :  { %v563_v57 = vsel %vm58_vm1, %v557_v55, %v561_v56 }
 0xc09   :  { %979 = vmatmul.msk.f32.vlgmr.msrb.gmra.mxu1 %vm79_vm2, %v563_v57 }
 0xc86   :  { %v586_v59 = vpop.f32.mrf.mxu1 }
 0xc87   :  { %v589_v60 = vadd.f32 %v586_v59, %v565_v58 }
 0xc89   :  { %1051 = vtanh.f32 %v589_v60  ;;  %v980_v62 = vmul.f32 -1.442695, %v589_v60 }
 0xc8b   :  { %1053 = vpow2.f32 %v980_v62 }
 0xc8f   :  { %v1052_v61 = vpop.eup %1051 }
 0xc90   :  { %628 = vrot.lane.b32.xlu0 %v1052_v61, %s1151_s9  ;;  %612 = vrot.lane.b32.xlu2 %v1052_v61, %s1147_s1 }
 0xc91   :  { %v1054_v63 = vpop.eup %1053 }
 0xc92   :  { %v593_v0 = vadd.f32 1.0, %v1054_v63 }
 0xc94   :  { %1055 = vrcp.f32 %v593_v0  ;;  %v605_v6 = vand.u32 2147483648, %v593_v0  ;;  %vm599_vm11 = vweird.f32 %v593_v0  ;;  %v603_v7 = vand.u32 2147483647, %v593_v0 }
 0xc96   :  { %v606_v9 = vor.u32 1.1754944e-38, %v605_v6  ;;  %vm604_vm13 = vcmp.eq.f32.partialorder %v603_v7, 8.507059e+37 }
 0xc9a   :  { %v1056_v1 = vpop.eup %1055 }
 0xc9b   :  { %v595_v2 = vmul.f32 %v1056_v1, %v593_v0  ;;  %vm600_vm10 = vweird.f32 %v1056_v1 }
 0xc9c   :  { %vm601_vm12 = vmor %vm599_vm11, %vm600_vm10 }
 0xc9d   :  { %v596_v3 = vsub.f32 1.0, %v595_v2  ;;  %v755_v2 = vld [vmem:[#allocation7 + $0x38] sm:$0xff] }
 0xc9f   :  { %v597_v4 = vmul.f32 %v1056_v1, %v596_v3 }
 0xca1   :  { %v598_v5 = vadd.f32 %v1056_v1, %v597_v4 }
 0xca3   :  { %v602_v8 = vsel %vm601_vm12, %v1056_v1, %v598_v5 }
 0xca4   :  { %v607_v11 = vsel %vm604_vm13, %v606_v9, %v602_v8 }
 0xca5   :  { %v627_v15 = vmul.f32 %v607_v11, %v541_v49  ;;  %v610_v16 = vmul.f32 %v607_v11, %v525_v45 }
 0xcea   :  { %v613_v10 = vpop.permute.xlu2 %612 }
 0xceb   :  { %v615_v12 = vmul.f32 %v613_v10, %v607_v11 }
 0xced   :  { %617 = vrot.lane.b32.xlu1 %v615_v12, %s1146_s0 }
 0xd02   :  { %v629_v13 = vpop.permute.xlu0 %628 }
 0xd03   :  { %v631_v14 = vmul.f32 %v629_v13, %v607_v11 }
 0xd05   :  { %633 = vrot.lane.b32.xlu2 %v631_v14, %s1143_s29 }
 0xd5f   :  { %v634_v17 = vpop.permute.xlu2 %633  ;;  %v618_v18 = vpop.permute.xlu1 %617 }
 0xd60   :  { %v636_v19 = vadd.f32 %v634_v17, %v627_v15  ;;  %v620_v20 = vadd.f32 %v618_v18, %v610_v16 }
 0xd62   :  { %1057 = vtanh.f32 %v636_v19 }
 0xd63   :  { %1059 = vtanh.f32 %v620_v20 }
 0xd68   :  { %v1058_v21 = vpop.eup %1057 }
 0xd69   :  { %v1060_v22 = vpop.eup %1059  ;;  %639 = vrot.lane.b32.xlu1 %v1058_v21, %s1143_s29 }
 0xd6a   :  { %623 = vrot.lane.b32.xlu0 %v1060_v22, %s1146_s0 }
 0xddb   :  { %v640_v23 = vpop.permute.xlu1 %639 }
 0xddc   :  { %v642_v24 = vmul.f32 %v640_v23, %v607_v11  ;;  %v624_v25 = vpop.permute.xlu0 %623 }
 0xddd   :  { %v626_v26 = vmul.f32 %v624_v25, %v607_v11 }
 0xdde   :  { %655 = vrot.lane.b32.xlu0 %v642_v24, %s1150_s8 }
 0xddf   :  { %651 = vrot.lane.b32.xlu2 %v626_v26, %s1149_s7 }
 0xe39   :  { %v652_v27 = vpop.permute.xlu2 %651 }
 0xe50   :  { %v656_v28 = vpop.permute.xlu0 %655 }
 0xe51   :  { %v658_v29 = vsel %vm58_vm1, %v652_v27, %v656_v28 }
 0xe52   :  { %981 = vmatmul.msk.f32.vlgmr.msrb.gmra.mxu2 %vm79_vm2, %v658_v29 }
 0xed5   :  { %v681_v31 = vpop.f32.mrf.mxu2 }
 0xed6   :  { %v684_v32 = vadd.f32 %v681_v31, %v660_v30 }
 0xed8   :  { %1061 = vtanh.f32 %v684_v32  ;;  %v982_v34 = vmul.f32 -1.442695, %v684_v32 }
 0xeda   :  { %1063 = vpow2.f32 %v982_v34 }
 0xede   :  { %v1062_v33 = vpop.eup %1061 }
 0xedf   :  { %723 = vrot.lane.b32.xlu2 %v1062_v33, %s1151_s9  ;;  %707 = vrot.lane.b32.xlu1 %v1062_v33, %s1147_s1 }
 0xee0   :  { %v1064_v35 = vpop.eup %1063 }
 0xee1   :  { %v688_v36 = vadd.f32 1.0, %v1064_v35 }
 0xee3   :  { %1065 = vrcp.f32 %v688_v36  ;;  %v700_v42 = vand.u32 2147483648, %v688_v36  ;;  %vm694_vm15 = vweird.f32 %v688_v36  ;;  %v698_v43 = vand.u32 2147483647, %v688_v36 }
 0xee5   :  { %v701_v45 = vor.u32 1.1754944e-38, %v700_v42  ;;  %vm699_vm4 = vcmp.eq.f32.partialorder %v698_v43, 8.507059e+37 }
 0xee9   :  { %v1066_v37 = vpop.eup %1065 }
 0xeea   :  { %v690_v38 = vmul.f32 %v1066_v37, %v688_v36  ;;  %vm695_vm14 = vweird.f32 %v1066_v37 }
 0xeeb   :  { %vm696_vm3 = vmor %vm694_vm15, %vm695_vm14 }
 0xeec   :  { %v691_v39 = vsub.f32 1.0, %v690_v38  ;;  %v1001_v38 = vld [vmem:[%s1307_s2] ss:$0 sm:$0xff]  ;;  %s1152_s2 = smov 112  }
 0xeee   :  { %v692_v40 = vmul.f32 %v1066_v37, %v691_v39 }
 0xef0   :  { %v693_v41 = vadd.f32 %v1066_v37, %v692_v40 }
 0xef2   :  { %v697_v44 = vsel %vm696_vm3, %v1066_v37, %v693_v41 }
 0xef3   :  { %v702_v47 = vsel %vm699_vm4, %v701_v45, %v697_v44 }
 0xef4   :  { %v722_v51 = vmul.f32 %v702_v47, %v636_v19  ;;  %v705_v55 = vmul.f32 %v702_v47, %v620_v20 }
 0xf39   :  { %v724_v46 = vpop.permute.xlu2 %723 }
 0xf3a   :  { %v726_v48 = vmul.f32 %v724_v46, %v702_v47 }
 0xf3c   :  { %728 = vrot.lane.b32.xlu1 %v726_v48, %s1143_s29 }
 0xf51   :  { %v708_v49 = vpop.permute.xlu1 %707 }
 0xf52   :  { %v710_v50 = vmul.f32 %v708_v49, %v702_v47 }
 0xf54   :  { %712 = vrot.lane.b32.xlu0 %v710_v50, %s1146_s0 }
 0xfae   :  { %v729_v52 = vpop.permute.xlu1 %728 }
 0xfaf   :  { %v731_v53 = vadd.f32 %v729_v52, %v722_v51 }
 0xfb1   :  { %1067 = vtanh.f32 %v731_v53 }
 0xfb7   :  { %v1068_v54 = vpop.eup %1067 }
 0xfb8   :  { %734 = vrot.lane.b32.xlu0 %v1068_v54, %s1143_s29 }
 0xfc6   :  { %v713_v56 = vpop.permute.xlu0 %712 }
 0xfc7   :  { %v715_v57 = vadd.f32 %v713_v56, %v705_v55 }
 0xfc9   :  { %1069 = vtanh.f32 %v715_v57 }
 0xfcf   :  { %v1070_v58 = vpop.eup %1069 }
 0xfd0   :  { %718 = vrot.lane.b32.xlu2 %v1070_v58, %s1146_s0 }
0x102a   :  { %v735_v59 = vpop.permute.xlu0 %734  ;;  %v719_v60 = vpop.permute.xlu2 %718 }
0x102b   :  { %v737_v61 = vmul.f32 %v735_v59, %v702_v47  ;;  %v721_v62 = vmul.f32 %v719_v60, %v702_v47 }
0x102d   :  { %750 = vrot.lane.b32.xlu2 %v737_v61, %s1150_s8  ;;  %746 = vrot.lane.b32.xlu1 %v721_v62, %s1149_s7  ;;  %v931_v62 = vld [vmem:[%s1308_s3] sm:$0xff] }
0x102e   :  { %956 = vmatpush.msra.mxu1 %v931_v62 }
0x1087   :  { %v751_v63 = vpop.permute.xlu2 %750 }
0x109f   :  { %v747_v0 = vpop.permute.xlu1 %746 }
0x10a0   :  { %v753_v1 = vsel %vm58_vm1, %v747_v0, %v751_v63 }
0x10a1   :  { %983 = vmatmul.msk.f32.vlgmr.msrb.gmra.mxu3 %vm79_vm2, %v753_v1 }
0x1124   :  { %v776_v3 = vpop.f32.mrf.mxu3 }
0x1125   :  { %v779_v4 = vadd.f32 %v776_v3, %v755_v2 }
0x1127   :  { %1071 = vtanh.f32 %v779_v4  ;;  %v984_v6 = vmul.f32 -1.442695, %v779_v4  ;;  %v1002_v4 = vld [vmem:[#allocation6] ss:$0 sm:$0xff] }
0x1129   :  { %1073 = vpow2.f32 %v984_v6 }
0x112d   :  { %v1072_v5 = vpop.eup %1071 }
0x112e   :  { %818 = vrot.lane.b32.xlu1 %v1072_v5, %s1151_s9  ;;  %802 = vrot.lane.b32.xlu0 %v1072_v5, %s1147_s1 }
0x112f   :  { %v1074_v7 = vpop.eup %1073 }
0x1130   :  { %v783_v8 = vadd.f32 1.0, %v1074_v7 }
0x1132   :  { %1075 = vrcp.f32 %v783_v8  ;;  %v795_v14 = vand.u32 2147483648, %v783_v8  ;;  %vm789_vm6 = vweird.f32 %v783_v8  ;;  %v793_v15 = vand.u32 2147483647, %v783_v8 }
0x1134   :  { %v796_v17 = vor.u32 1.1754944e-38, %v795_v14  ;;  %vm794_vm8 = vcmp.eq.f32.partialorder %v793_v15, 8.507059e+37 }
0x1138   :  { %v1076_v9 = vpop.eup %1075 }
0x1139   :  { %v785_v10 = vmul.f32 %v1076_v9, %v783_v8  ;;  %vm790_vm5 = vweird.f32 %v1076_v9 }
0x113a   :  { %vm791_vm7 = vmor %vm789_vm6, %vm790_vm5 }
0x113b   :  { %v786_v11 = vsub.f32 1.0, %v785_v10 }
0x113d   :  { %v787_v12 = vmul.f32 %v1076_v9, %v786_v11 }
0x113f   :  { %v788_v13 = vadd.f32 %v1076_v9, %v787_v12 }
0x1141   :  { %v792_v16 = vsel %vm791_vm7, %v1076_v9, %v788_v13 }
0x1142   :  { %v797_v19 = vsel %vm794_vm8, %v796_v17, %v792_v16 }
0x1143   :  { %v800_v23 = vmul.f32 %v797_v19, %v715_v57  ;;  %v817_v27 = vmul.f32 %v797_v19, %v731_v53 }
0x11a0   :  { %v819_v18 = vpop.permute.xlu1 %818  ;;  %v803_v20 = vpop.permute.xlu0 %802 }
0x11a1   :  { %v821_v21 = vmul.f32 %v819_v18, %v797_v19  ;;  %v805_v22 = vmul.f32 %v803_v20, %v797_v19 }
0x11a3   :  { %823 = vrot.lane.b32.xlu0 %v821_v21, %s1143_s29  ;;  %807 = vrot.lane.b32.xlu2 %v805_v22, %s1146_s0 }
0x11fd   :  { %v808_v24 = vpop.permute.xlu2 %807 }
0x11fe   :  { %v810_v25 = vadd.f32 %v808_v24, %v800_v23 }
0x1200   :  { %1077 = vtanh.f32 %v810_v25 }
0x1206   :  { %v1078_v26 = vpop.eup %1077 }
0x1207   :  { %813 = vrot.lane.b32.xlu1 %v1078_v26, %s1146_s0 }
0x1215   :  { %v824_v28 = vpop.permute.xlu0 %823 }
0x1216   :  { %v826_v29 = vadd.f32 %v824_v28, %v817_v27 }
0x1218   :  { %1079 = vtanh.f32 %v826_v29 }
0x121e   :  { %v1080_v30 = vpop.eup %1079 }
0x121f   :  { %829 = vrot.lane.b32.xlu2 %v1080_v30, %s1143_s29 }
0x1279   :  { %v830_v31 = vpop.permute.xlu2 %829  ;;  %v814_v32 = vpop.permute.xlu1 %813 }
0x127a   :  { %v832_v33 = vmul.f32 %v830_v31, %v797_v19  ;;  %v816_v34 = vmul.f32 %v814_v32, %v797_v19 }
0x127c   :  { %863 = vrot.lane.b32.xlu1 %v832_v33, %s1150_s8  ;;  %840 = vrot.lane.b32.xlu0 %v816_v34, %s1149_s7 }
0x12ee   :  { %v841_v35 = vpop.permute.xlu0 %840  ;;  %v864_v36 = vpop.permute.xlu1 %863 }
0x12ef   :  { %843 = vst.msk [vmem:[#allocation2] sm:$0xff] %vm58_vm1, %v841_v35  ;;  %v866_v37 = vsel %vm58_vm1, %v841_v35, %v864_v36 }
0x12f0   :  { %985 = vmatmul.msk.f32.vlgmr.msra.gmra.mxu0 %vm79_vm2, %v866_v37 }
0x136d   :  { %v891_v39 = vpop.f32.mrf.mxu0 }
0x136e   :  { %v892_v40 = vadd.f32 %v1001_v38, %v891_v39 }
0x1370   :  { %1081 = vtanh.f32 %v892_v40  ;;  %v986_v42 = vmul.f32 -1.442695, %v892_v40 }
0x1372   :  { %1083 = vpow2.f32 %v986_v42 }
0x1376   :  { %v1082_v41 = vpop.eup %1081 }
0x1377   :  { %916 = vrot.lane.b32.xlu2 %v1082_v41, %s1151_s9 }
0x1378   :  { %v1084_v43 = vpop.eup %1083 }
0x1379   :  { %v897_v44 = vadd.f32 1.0, %v1084_v43 }
0x137b   :  { %1085 = vrcp.f32 %v897_v44  ;;  %v909_v50 = vand.u32 2147483648, %v897_v44  ;;  %vm903_vm9 = vweird.f32 %v897_v44  ;;  %v907_v51 = vand.u32 2147483647, %v897_v44 }
0x137d   :  { %v910_v53 = vor.u32 1.1754944e-38, %v909_v50  ;;  %vm908_vm11 = vcmp.eq.f32.partialorder %v907_v51, 8.507059e+37 }
0x1381   :  { %v1086_v45 = vpop.eup %1085 }
0x1382   :  { %v899_v46 = vmul.f32 %v1086_v45, %v897_v44  ;;  %vm904_vm2 = vweird.f32 %v1086_v45 }
0x1383   :  { %vm905_vm10 = vmor %vm903_vm9, %vm904_vm2 }
0x1384   :  { %v900_v47 = vsub.f32 1.0, %v899_v46 }
0x1386   :  { %v901_v48 = vmul.f32 %v1086_v45, %v900_v47 }
0x1388   :  { %v902_v49 = vadd.f32 %v1086_v45, %v901_v48 }
0x138a   :  { %v906_v52 = vsel %vm905_vm10, %v1086_v45, %v902_v49 }
0x138b   :  { %v911_v55 = vsel %vm908_vm11, %v910_v53, %v906_v52 }
0x138c   :  { %v914_v57 = vmul.f32 %v911_v55, %v826_v29 }
0x13d1   :  { %v917_v54 = vpop.permute.xlu2 %916 }
0x13d2   :  { %v919_v56 = vmul.f32 %v917_v54, %v911_v55 }
0x13d4   :  { %921 = vrot.lane.b32.xlu0 %v919_v56, %s1143_s29 }
0x13dc   :  { %845 = vrot.lane.b32.xlu0 %v810_v25, %s1152_s2 }
0x1446   :  { %v922_v58 = vpop.permute.xlu0 %921 }
0x1447   :  { %v924_v59 = vadd.f32 %v922_v58, %v914_v57 }
0x1449   :  { %1087 = vtanh.f32 %v924_v59 }
0x144e   :  { %v846_v60 = vpop.permute.xlu0 %845 }
0x144f   :  { %v1088_v61 = vpop.eup %1087  ;;  %848 = vst.msk [vmem:[#allocation3] sm:$0xff] %vm58_vm1, %v846_v60  ;;  %vm961_vm1 = vcmask 7168  }
0x1450   :  { %927 = vrot.lane.b32.xlu1 %v1088_v61, %s1143_s29 }
0x1458   :  { %850 = vrot.lane.b32.xlu1 %v832_v33, %s1148_s6 }
0x14c2   :  { %v928_v63 = vpop.permute.xlu1 %927 }
0x14c3   :  { %v930_v0 = vmul.f32 %v928_v63, %v911_v55 }
0x14c5   :  { %937 = vrot.lane.b32.xlu2 %v930_v0, %s1148_s6 }
0x14ca   :  { %v851_v1 = vpop.permute.xlu1 %850 }
0x14cb   :  { %854 = vst.msk [vmem:[#allocation4] sm:$0xff] %vm61_vm0, %v851_v1 }
0x14cd   :  { %856 = vrot.lane.b32.xlu2 %v826_v29, %s1153_s14 }
0x151f   :  { %v938_v2 = vpop.permute.xlu2 %937 }
0x1520   :  { %987 = vmatmul.msk.f32.vlgmr.msra.gmra.mxu1 %vm61_vm0, %v938_v2 }
0x1527   :  { %v857_v3 = vpop.permute.xlu2 %856 }
0x1528   :  { %859 = vst.msk [vmem:[#allocation5] sm:$0xff] %vm61_vm0, %v857_v3 }
0x159d   :  { %v958_v5 = vpop.f32.mrf.mxu1 }
0x159e   :  { %v959_v6 = vadd.f32 %v1002_v4, %v958_v5 }
0x15a0   :  { %962 = vst.msk [vmem:[%s1310_s5] sm:$0xff] %vm961_vm1, %v959_v6 }
0x15a1   :  { %967 = vsyncpa [#allocation8], 1 }
0x15a2   :  { %968 = vsyncpa [#allocation10], 1 }

</bundles_post_ra>
